<compile_context>
chip_gen: v7x
topology: tpu7x:2x2x1
jax: 0.10.0
libtpu: 0.0.40
codegen_flags: <defaults>
</compile_context>

<pallas_src>
import numpy as np
import jax
import jax.numpy as jnp
from jax.experimental import pallas as pl
from jax.experimental.pallas import tpu as pltpu

# ---------------- model configuration (small, forward-consistent shapes) -----
BATCH = 2
IMG_H, IMG_W, IMG_C = 16, 16, 4          # obs_space['image']  (H, W, C)
C_DIM = 3                                 # obs_space['contract']
F_DIM = 5                                 # obs_space['features']
NUM_OUTPUTS = 6                           # action logits
POST_HIDDEN = 32                          # post_fcnet_hiddens = [32]

# conv_filters = [[8, [4,4], 2], [16, [4,4], 2]]
CONV1 = dict(cout=8, k=4, stride=2, padding=((1, 1), (1, 1)))   # same_padding(16, 4, 2)
CONV2 = dict(cout=16, k=4, stride=2, padding=None)               # last filter: no pad
CONV1_OUT = (IMG_H + 2 - CONV1["k"]) // CONV1["stride"] + 1       # 8
CONV2_OUT = (CONV1_OUT - CONV2["k"]) // CONV2["stride"] + 1       # 3
CONV_FLAT = CONV2["cout"] * CONV2_OUT * CONV2_OUT                 # 144
COMBINED = CONV_FLAT + (C_DIM + F_DIM) * 5                        # 184
OUT_LANES = 128                                                   # lane-dense output


def _round_up(x, m):
    return (x + m - 1) // m * m


# ---------------- fused Pallas kernel -----------------------------------------
def _fused_vision_kernel(p1_ref, extra_ref, g_ref, w1_ref, b1_ref,
                         w2_ref, b2_ref, wfc_ref, bfc_ref,
                         whead_ref, bhead_ref, out_ref):
    f32 = jnp.float32
    n = extra_ref.shape[0]                      # batch
    k2 = CONV2["k"] ** 2                        # 16 conv2 taps
    rpt = g_ref.shape[0] // k2                  # padded rows per tap (multiple of 8)
    nq = CONV2_OUT ** 2                         # 9 conv2 spatial positions
    pad_rows = out_ref.shape[0] - n

    # ---- conv1, both branches, batch folded into M: (N*64, 64) @ (64, 16) --------
    y1 = jnp.dot(p1_ref[...], w1_ref[...], preferred_element_type=f32) + b1_ref[...]
    y1 = jnp.maximum(y1, 0.0)                                     # conv_activation = relu

    # ---- conv2 im2col: ONE stacked selection matmul (bf16 0/1 selector is exact;
    # upcast to f32 so the gathered activations stay bit-exact). ---------------------
    p_all = jnp.dot(g_ref[...].astype(f32), y1, preferred_element_type=f32)  # (16*rpt, 16)

    # Re-layout taps into lanes: (16*rpt, 16) -> (rpt, 256).  Sublane slice offsets
    # are multiples of 8 (rpt padded); concat is pure VPU/XLU work, no MXU issue.
    s2 = jnp.concatenate([p_all[t * rpt:(t + 1) * rpt, :] for t in range(k2)], axis=1)

    # ---- conv2 weights (block-diag over branches) + bias + relu: ONE matmul -------
    y2 = jnp.dot(s2, w2_ref[...], preferred_element_type=f32) + b2_ref[...]
    y2 = jnp.maximum(y2, 0.0)                                     # (rpt, 32); rows >= nq*n unused

    # ---- re-layout positions into lanes, batch into rows, append contract/features.
    # Column layout q*32 + [policy 16 | value 16]; NCHW-flatten order folded into wfc.
    s3 = jnp.concatenate([y2[q * n:(q + 1) * n, :] for q in range(nq)]
                         + [extra_ref[...]], axis=1)              # (n, 9*32 + 8)
    if pad_rows:                                                  # full 8-sublane tile
        s3 = jnp.concatenate([s3, jnp.zeros((pad_rows, s3.shape[1]), f32)], axis=0)

    # ---- post-conv FC hidden (no activation -- matches reference: activation only
    # applied when i < len(post_fcnet_hiddens) - 1) then both heads: TWO matmuls. ----
    h = jnp.dot(s3, wfc_ref[...], preferred_element_type=f32) + bfc_ref[...]        # (8, 64)
    out_ref[...] = jnp.dot(h, whead_ref[...], preferred_element_type=f32) + bhead_ref[...]


# ---------------- one-time weight / constant packing ---------------------------
def _build_gather(n):
    """0/1 matrix implementing conv2's im2col as ONE stacked selection matmul.
    Row order: tap-major, each tap block padded to a multiple of 8 rows, rows inside
    a block ordered (position, batch).  Stored bf16 (exact) to halve constant DMA."""
    h1, h2, k, s = CONV1_OUT, CONV2_OUT, CONV2["k"], CONV2["stride"]
    nq = h2 * h2
    rpt = _round_up(nq * n, 8)
    g = np.zeros((k * k * rpt, h1 * h1 * n), np.float32)
    for th in range(k):
        for tw in range(k):
            t = th * k + tw
            for qh in range(h2):
                for qw in range(h2):
                    q = qh * h2 + qw
                    p = (s * qh + th) * h1 + (s * qw + tw)
                    for b in range(n):
                        g[t * rpt + q * n + b, b * h1 * h1 + p] = 1.0
    return jnp.asarray(g, jnp.bfloat16)


def pack_params(params, n):
    """Transform reference-layout weights (HWIO convs, (184, H) FCs with NCHW-flatten
    row order) into the fused-kernel operands.  Pure one-time preprocessing."""
    k, c1, c2, hdim, nq = CONV1["k"], CONV1["cout"], CONV2["cout"], POST_HIDDEN, CONV2_OUT ** 2

    # conv1: concat policy/value output channels -> (64, 16)
    w1 = jnp.concatenate([params["conv1_w"].reshape(k * k * IMG_C, c1),
                          params["vf_conv1_w"].reshape(k * k * IMG_C, c1)], axis=1)
    b1 = jnp.concatenate([params["conv1_b"], params["vf_conv1_b"]]).reshape(1, -1)

    # conv2: per-tap block-diagonal, flattened to ONE (k*k*2*c1, 2*c2) weight whose
    # row order (t*16 + cin) matches the in-kernel tap->lane interleave of s2.
    w2p = params["conv2_w"].reshape(k * k, c1, c2)
    w2v = params["vf_conv2_w"].reshape(k * k, c1, c2)
    w2 = jnp.zeros((k * k, 2 * c1, 2 * c2), jnp.float32)
    w2 = w2.at[:, :c1, :c2].set(w2p).at[:, c1:, c2:].set(w2v)
    w2flat = w2.reshape(k * k * 2 * c1, 2 * c2)                              # (256, 32)
    b2 = jnp.concatenate([params["conv2_b"], params["vf_conv2_b"]]).reshape(1, -1)

    # post-conv FC1: fold the NCHW flatten order and the repeat(1,5) into the weights.
    def split_fc1(w):                                  # w: (COMBINED, hdim), reference layout
        w_conv = jnp.transpose(w[:CONV_FLAT].reshape(c2, nq, hdim), (1, 0, 2))   # (9, 16, H)
        w_c = w[CONV_FLAT:CONV_FLAT + 5 * C_DIM].reshape(5, C_DIM, hdim).sum(0)
        w_f = w[CONV_FLAT + 5 * C_DIM:].reshape(5, F_DIM, hdim).sum(0)
        return w_conv, jnp.concatenate([w_c, w_f], axis=0)                       # (8, H)

    wcp, wep = split_fc1(params["fc1_w"])
    wcv, wev = split_fc1(params["vf_fc1_w"])
    wfc_conv = jnp.zeros((nq, 2 * c2, 2 * hdim), jnp.float32)
    wfc_conv = wfc_conv.at[:, :c2, :hdim].set(wcp).at[:, c2:, hdim:].set(wcv)
    wfc_conv = wfc_conv.reshape(nq * 2 * c2, 2 * hdim)                       # rows: q*32 + c2tot
    wfc_extra = jnp.zeros((C_DIM + F_DIM, 2 * hdim), jnp.float32)
    wfc_extra = wfc_extra.at[:, :hdim].set(wep).at[:, hdim:].set(wev)
    wfc = jnp.concatenate([wfc_conv, wfc_extra], axis=0)                     # (296, 64)
    bfc = jnp.concatenate([params["fc1_b"], params["vf_fc1_b"]]).reshape(1, -1)

    # heads: block-diag, zero-padded to 128 output lanes (lane-dense stores).
    whead = jnp.zeros((2 * hdim, OUT_LANES), jnp.float32)
    whead = whead.at[:hdim, :NUM_OUTPUTS].set(params["logits_w"])
    whead = whead.at[hdim:, NUM_OUTPUTS:NUM_OUTPUTS + 1].set(params["vf_out_w"])
    bhead = jnp.zeros((1, OUT_LANES), jnp.float32)
    bhead = bhead.at[0, :NUM_OUTPUTS].set(params["logits_b"])
    bhead = bhead.at[0, NUM_OUTPUTS:NUM_OUTPUTS + 1].set(params["vf_out_b"])

    return dict(g=_build_gather(n), w1=w1, b1=b1, w2flat=w2flat, b2=b2,
                wfc=wfc, bfc=bfc, whead=whead, bhead=bhead)


# ---------------- forward (one fused pallas_call for logits AND value) ---------
def _im2col_conv1(image):
    """Static-slice im2col for conv1 (zero-FLOP XLA glue, fused under jit)."""
    x = jnp.pad(image.astype(jnp.float32),
                ((0, 0), CONV1["padding"][0], CONV1["padding"][1], (0, 0)))
    n = x.shape[0]
    k, s, ho = CONV1["k"], CONV1["stride"], CONV1_OUT
    cols = []
    for i in range(k):
        for j in range(k):
            cols.append(x[:, i:i + s * (ho - 1) + 1:s, j:j + s * (ho - 1) + 1:s, :])
    # feature order (kh, kw, cin) matches the HWIO weight flatten in pack_params.
    return jnp.concatenate(cols, axis=-1).reshape(n * ho * ho, k * k * IMG_C)


@jax.jit
def vision_network_forward_and_value(packed, image, contract, features):
    """Returns (logits (N, NUM_OUTPUTS), value (N,)) — both branches in one kernel."""
    n = image.shape[0]
    m_out = _round_up(n, 8)
    patches1 = _im2col_conv1(image)                                          # (n*64, 64)
    extra = jnp.concatenate([contract.astype(jnp.float32),
                             features.astype(jnp.float32)], axis=1)          # (n, 8)
    args = (patches1, extra, packed["g"], packed["w1"], packed["b1"],
            packed["w2flat"], packed["b2"], packed["wfc"], packed["bfc"],
            packed["whead"], packed["bhead"])

    def full_spec(a):
        nd = a.ndim
        return pl.BlockSpec(a.shape, lambda i, _nd=nd: (0,) * _nd)

    out = pl.pallas_call(
        _fused_vision_kernel,
        out_shape=jax.ShapeDtypeStruct((m_out, OUT_LANES), jnp.float32),
        grid_spec=pltpu.PrefetchScalarGridSpec(
            num_scalar_prefetch=0,
            grid=(1,),
            in_specs=[full_spec(a) for a in args],
            out_specs=pl.BlockSpec((m_out, OUT_LANES), lambda i: (0, 0)),
        ),
        compiler_params=pltpu.CompilerParams(dimension_semantics=("arbitrary",)),
    )(*args)
    return out[:n, :NUM_OUTPUTS], out[:n, NUM_OUTPUTS]


# ---------------- deterministic reference-layout parameter init ----------------
def init_params(key):
    # TODO(synk): reference uses xavier_uniform / normc initializers; here we use
    # deterministic scaled normals (synthetic weights, same shapes/semantics).
    ks = jax.random.split(key, 8)
    nrm = lambda k_, shp, s=0.1: (s * jax.random.normal(k_, shp)).astype(jnp.float32)
    zeros = lambda shp: jnp.zeros(shp, jnp.float32)
    return {
        # policy branch
        "conv1_w": nrm(ks[0], (4, 4, IMG_C, CONV1["cout"])), "conv1_b": zeros((CONV1["cout"],)),
        "conv2_w": nrm(ks[1], (4, 4, CONV1["cout"], CONV2["cout"])), "conv2_b": zeros((CONV2["cout"],)),
        "fc1_w": nrm(ks[2], (COMBINED, POST_HIDDEN)), "fc1_b": zeros((POST_HIDDEN,)),
        "logits_w": nrm(ks[3], (POST_HIDDEN, NUM_OUTPUTS)), "logits_b": zeros((NUM_OUTPUTS,)),
        # value branch
        "vf_conv1_w": nrm(ks[4], (4, 4, IMG_C, CONV1["cout"])), "vf_conv1_b": zeros((CONV1["cout"],)),
        "vf_conv2_w": nrm(ks[5], (4, 4, CONV1["cout"], CONV2["cout"])), "vf_conv2_b": zeros((CONV2["cout"],)),
        "vf_fc1_w": nrm(ks[6], (COMBINED, POST_HIDDEN)), "vf_fc1_b": zeros((POST_HIDDEN,)),
        "vf_out_w": nrm(ks[7], (POST_HIDDEN, 1)), "vf_out_b": zeros((1,)),
    }


# ---------------- pure-JAX reference (numerics check only) ---------------------
def _reference_forward(params, image, contract, features):
    hp = jax.lax.Precision.HIGHEST
    def branch(w1, b1, w2, b2, wfc, bfc, wout, bout):
        x = image.astype(jnp.float32)
        y = jax.lax.conv_general_dilated(x, w1, (2, 2), CONV1["padding"],
                                         dimension_numbers=("NHWC", "HWIO", "NHWC"),
                                         precision=hp)
        y = jnp.maximum(y + b1, 0.0)
        y = jax.lax.conv_general_dilated(y, w2, (2, 2), "VALID",
                                         dimension_numbers=("NHWC", "HWIO", "NHWC"),
                                         precision=hp)
        y = jnp.maximum(y + b2, 0.0)
        flat = jnp.transpose(y, (0, 3, 1, 2)).reshape(image.shape[0], -1)   # NCHW flatten
        z = jnp.concatenate([flat,
                             jnp.tile(contract.astype(jnp.float32), (1, 5)),
                             jnp.tile(features.astype(jnp.float32), (1, 5))], axis=1)
        h = jnp.dot(z, wfc, precision=hp) + bfc
        return jnp.dot(h, wout, precision=hp) + bout
    logits = branch(params["conv1_w"], params["conv1_b"], params["conv2_w"], params["conv2_b"],
                    params["fc1_w"], params["fc1_b"], params["logits_w"], params["logits_b"])
    value = branch(params["vf_conv1_w"], params["vf_conv1_b"], params["vf_conv2_w"], params["vf_conv2_b"],
                   params["vf_fc1_w"], params["vf_fc1_b"], params["vf_out_w"], params["vf_out_b"])
    return logits, value[:, 0]


# ---------------- main ----------------------------------------------------------
if __name__ == "__main__":
    key = jax.random.PRNGKey(0)
    kp, ki, kc, kf = jax.random.split(key, 4)
    params = init_params(kp)
    packed = pack_params(params, BATCH)

    image = jax.random.uniform(ki, (BATCH, IMG_H, IMG_W, IMG_C), jnp.float32)   # NHWC obs
    contract = jax.random.normal(kc, (BATCH, C_DIM), jnp.float32)
    features = jax.random.normal(kf, (BATCH, F_DIM), jnp.float32)

    logits, value = vision_network_forward_and_value(packed, image, contract, features)
    logits, value = jax.block_until_ready((logits, value))

    assert logits.shape == (BATCH, NUM_OUTPUTS), logits.shape
    assert value.shape == (BATCH,), value.shape

    ref_logits, ref_value = _reference_forward(params, image, contract, features)
    np.testing.assert_allclose(np.asarray(logits), np.asarray(ref_logits), rtol=1e-2, atol=1e-2)
    np.testing.assert_allclose(np.asarray(value), np.asarray(ref_value), rtol=1e-2, atol=1e-2)

    print("KERNEL_OK")
</pallas_src>

<mosaic_0001>
module attributes {stable_mosaic.version = 11 : i64} {
  func.func @_fused_vision_kernel(%arg0: i32, %arg1: memref<128x64xf32, #tpu.memory_space<vmem>>, %arg2: memref<2x8xf32, #tpu.memory_space<vmem>>, %arg3: memref<384x128xbf16, #tpu.memory_space<vmem>>, %arg4: memref<64x16xf32, #tpu.memory_space<vmem>>, %arg5: memref<1x16xf32, #tpu.memory_space<vmem>>, %arg6: memref<256x32xf32, #tpu.memory_space<vmem>>, %arg7: memref<1x32xf32, #tpu.memory_space<vmem>>, %arg8: memref<296x64xf32, #tpu.memory_space<vmem>>, %arg9: memref<1x64xf32, #tpu.memory_space<vmem>>, %arg10: memref<64x128xf32, #tpu.memory_space<vmem>>, %arg11: memref<1x128xf32, #tpu.memory_space<vmem>>, %arg12: memref<8x128xf32, #tpu.memory_space<vmem>>) attributes {dimension_semantics = [#tpu.dimension_semantics<arbitrary>], iteration_bounds = array<i64: 1>, scalar_prefetch = 0 : i64, scratch_operands = 0 : i64, tpu.core_type = #tpu.core_type<tc>, window_params = [{pipeline_mode = #tpu.pipeline_mode<synchronous>, transform_indices = @transform_0, window_bounds = array<i64: 128, 64>}, {pipeline_mode = #tpu.pipeline_mode<synchronous>, transform_indices = @transform_1, window_bounds = array<i64: 2, 8>}, {pipeline_mode = #tpu.pipeline_mode<synchronous>, transform_indices = @transform_2, window_bounds = array<i64: 384, 128>}, {pipeline_mode = #tpu.pipeline_mode<synchronous>, transform_indices = @transform_3, window_bounds = array<i64: 64, 16>}, {pipeline_mode = #tpu.pipeline_mode<synchronous>, transform_indices = @transform_4, window_bounds = array<i64: 1, 16>}, {pipeline_mode = #tpu.pipeline_mode<synchronous>, transform_indices = @transform_5, window_bounds = array<i64: 256, 32>}, {pipeline_mode = #tpu.pipeline_mode<synchronous>, transform_indices = @transform_6, window_bounds = array<i64: 1, 32>}, {pipeline_mode = #tpu.pipeline_mode<synchronous>, transform_indices = @transform_7, window_bounds = array<i64: 296, 64>}, {pipeline_mode = #tpu.pipeline_mode<synchronous>, transform_indices = @transform_8, window_bounds = array<i64: 1, 64>}, {pipeline_mode = #tpu.pipeline_mode<synchronous>, transform_indices = @transform_9, window_bounds = array<i64: 64, 128>}, {pipeline_mode = #tpu.pipeline_mode<synchronous>, transform_indices = @transform_10, window_bounds = array<i64: 1, 128>}, {pipeline_mode = #tpu.pipeline_mode<synchronous>, transform_indices = @transform_11, window_bounds = array<i64: 8, 128>}]} {
    %c0 = arith.constant 0 : index
    %c0_0 = arith.constant 0 : index
    %0 = vector.load %arg1[%c0, %c0_0] : memref<128x64xf32, #tpu.memory_space<vmem>>, vector<128x64xf32>
    %c0_1 = arith.constant 0 : index
    %c0_2 = arith.constant 0 : index
    %1 = vector.load %arg4[%c0_1, %c0_2] : memref<64x16xf32, #tpu.memory_space<vmem>>, vector<64x16xf32>
    %cst = arith.constant dense<0.000000e+00> : vector<128x16xf32>
    %2 = tpu.matmul %0, %1, %cst {dimension_numbers = #tpu.dot_dimension_numbers<[1], [0], [0], [1], [0, 0, 1, 1], [], []>} : vector<128x64xf32>, vector<64x16xf32>, vector<128x16xf32> -> vector<128x16xf32>
    %c0_3 = arith.constant 0 : index
    %c0_4 = arith.constant 0 : index
    %3 = vector.load %arg5[%c0_3, %c0_4] : memref<1x16xf32, #tpu.memory_space<vmem>>, vector<1x16xf32>
    %4 = vector.broadcast %3 : vector<1x16xf32> to vector<128x16xf32>
    %5 = arith.addf %2, %4 : vector<128x16xf32>
    %cst_5 = arith.constant 0.000000e+00 : f32
    %6 = vector.broadcast %cst_5 : f32 to vector<128x16xf32>
    %7 = arith.maximumf %5, %6 : vector<128x16xf32>
    %c0_6 = arith.constant 0 : index
    %c0_7 = arith.constant 0 : index
    %8 = vector.load %arg3[%c0_6, %c0_7] : memref<384x128xbf16, #tpu.memory_space<vmem>>, vector<384x128xbf16>
    %9 = arith.extf %8 : vector<384x128xbf16> to vector<384x128xf32>
    %cst_8 = arith.constant dense<0.000000e+00> : vector<384x16xf32>
    %10 = tpu.matmul %9, %7, %cst_8 {dimension_numbers = #tpu.dot_dimension_numbers<[1], [0], [0], [1], [0, 0, 1, 1], [], []>} : vector<384x128xf32>, vector<128x16xf32>, vector<384x16xf32> -> vector<384x16xf32>
    %11 = vector.extract_strided_slice %10 {offsets = [0, 0], sizes = [24, 16], strides = [1, 1]} : vector<384x16xf32> to vector<24x16xf32>
    %12 = vector.extract_strided_slice %10 {offsets = [24, 0], sizes = [24, 16], strides = [1, 1]} : vector<384x16xf32> to vector<24x16xf32>
    %13 = vector.extract_strided_slice %10 {offsets = [48, 0], sizes = [24, 16], strides = [1, 1]} : vector<384x16xf32> to vector<24x16xf32>
    %14 = vector.extract_strided_slice %10 {offsets = [72, 0], sizes = [24, 16], strides = [1, 1]} : vector<384x16xf32> to vector<24x16xf32>
    %15 = vector.extract_strided_slice %10 {offsets = [96, 0], sizes = [24, 16], strides = [1, 1]} : vector<384x16xf32> to vector<24x16xf32>
    %16 = vector.extract_strided_slice %10 {offsets = [120, 0], sizes = [24, 16], strides = [1, 1]} : vector<384x16xf32> to vector<24x16xf32>
    %17 = vector.extract_strided_slice %10 {offsets = [144, 0], sizes = [24, 16], strides = [1, 1]} : vector<384x16xf32> to vector<24x16xf32>
    %18 = vector.extract_strided_slice %10 {offsets = [168, 0], sizes = [24, 16], strides = [1, 1]} : vector<384x16xf32> to vector<24x16xf32>
    %19 = vector.extract_strided_slice %10 {offsets = [192, 0], sizes = [24, 16], strides = [1, 1]} : vector<384x16xf32> to vector<24x16xf32>
    %20 = vector.extract_strided_slice %10 {offsets = [216, 0], sizes = [24, 16], strides = [1, 1]} : vector<384x16xf32> to vector<24x16xf32>
    %21 = vector.extract_strided_slice %10 {offsets = [240, 0], sizes = [24, 16], strides = [1, 1]} : vector<384x16xf32> to vector<24x16xf32>
    %22 = vector.extract_strided_slice %10 {offsets = [264, 0], sizes = [24, 16], strides = [1, 1]} : vector<384x16xf32> to vector<24x16xf32>
    %23 = vector.extract_strided_slice %10 {offsets = [288, 0], sizes = [24, 16], strides = [1, 1]} : vector<384x16xf32> to vector<24x16xf32>
    %24 = vector.extract_strided_slice %10 {offsets = [312, 0], sizes = [24, 16], strides = [1, 1]} : vector<384x16xf32> to vector<24x16xf32>
    %25 = vector.extract_strided_slice %10 {offsets = [336, 0], sizes = [24, 16], strides = [1, 1]} : vector<384x16xf32> to vector<24x16xf32>
    %26 = vector.extract_strided_slice %10 {offsets = [360, 0], sizes = [24, 16], strides = [1, 1]} : vector<384x16xf32> to vector<24x16xf32>
    %27 = tpu.concatenate %11, %12, %13, %14, %15, %16, %17, %18, %19, %20, %21, %22, %23, %24, %25, %26 in 1 : vector<24x16xf32>, vector<24x16xf32>, vector<24x16xf32>, vector<24x16xf32>, vector<24x16xf32>, vector<24x16xf32>, vector<24x16xf32>, vector<24x16xf32>, vector<24x16xf32>, vector<24x16xf32>, vector<24x16xf32>, vector<24x16xf32>, vector<24x16xf32>, vector<24x16xf32>, vector<24x16xf32>, vector<24x16xf32> -> vector<24x256xf32>
    %c0_9 = arith.constant 0 : index
    %c0_10 = arith.constant 0 : index
    %28 = vector.load %arg6[%c0_9, %c0_10] : memref<256x32xf32, #tpu.memory_space<vmem>>, vector<256x32xf32>
    %cst_11 = arith.constant dense<0.000000e+00> : vector<24x32xf32>
    %29 = tpu.matmul %27, %28, %cst_11 {dimension_numbers = #tpu.dot_dimension_numbers<[1], [0], [0], [1], [0, 0, 1, 1], [], []>} : vector<24x256xf32>, vector<256x32xf32>, vector<24x32xf32> -> vector<24x32xf32>
    %c0_12 = arith.constant 0 : index
    %c0_13 = arith.constant 0 : index
    %30 = vector.load %arg7[%c0_12, %c0_13] : memref<1x32xf32, #tpu.memory_space<vmem>>, vector<1x32xf32>
    %31 = vector.broadcast %30 : vector<1x32xf32> to vector<24x32xf32>
    %32 = arith.addf %29, %31 : vector<24x32xf32>
    %cst_14 = arith.constant 0.000000e+00 : f32
    %33 = vector.broadcast %cst_14 : f32 to vector<24x32xf32>
    %34 = arith.maximumf %32, %33 : vector<24x32xf32>
    %35 = vector.extract_strided_slice %34 {offsets = [0, 0], sizes = [2, 32], strides = [1, 1]} : vector<24x32xf32> to vector<2x32xf32>
    %36 = vector.extract_strided_slice %34 {offsets = [2, 0], sizes = [2, 32], strides = [1, 1]} : vector<24x32xf32> to vector<2x32xf32>
    %37 = vector.extract_strided_slice %34 {offsets = [4, 0], sizes = [2, 32], strides = [1, 1]} : vector<24x32xf32> to vector<2x32xf32>
    %38 = vector.extract_strided_slice %34 {offsets = [6, 0], sizes = [2, 32], strides = [1, 1]} : vector<24x32xf32> to vector<2x32xf32>
    %39 = vector.extract_strided_slice %34 {offsets = [8, 0], sizes = [2, 32], strides = [1, 1]} : vector<24x32xf32> to vector<2x32xf32>
    %40 = vector.extract_strided_slice %34 {offsets = [10, 0], sizes = [2, 32], strides = [1, 1]} : vector<24x32xf32> to vector<2x32xf32>
    %41 = vector.extract_strided_slice %34 {offsets = [12, 0], sizes = [2, 32], strides = [1, 1]} : vector<24x32xf32> to vector<2x32xf32>
    %42 = vector.extract_strided_slice %34 {offsets = [14, 0], sizes = [2, 32], strides = [1, 1]} : vector<24x32xf32> to vector<2x32xf32>
    %43 = vector.extract_strided_slice %34 {offsets = [16, 0], sizes = [2, 32], strides = [1, 1]} : vector<24x32xf32> to vector<2x32xf32>
    %c0_15 = arith.constant 0 : index
    %c0_16 = arith.constant 0 : index
    %44 = vector.load %arg2[%c0_15, %c0_16] : memref<2x8xf32, #tpu.memory_space<vmem>>, vector<2x8xf32>
    %45 = tpu.concatenate %35, %36, %37, %38, %39, %40, %41, %42, %43, %44 in 1 : vector<2x32xf32>, vector<2x32xf32>, vector<2x32xf32>, vector<2x32xf32>, vector<2x32xf32>, vector<2x32xf32>, vector<2x32xf32>, vector<2x32xf32>, vector<2x32xf32>, vector<2x8xf32> -> vector<2x296xf32>
    %cst_17 = arith.constant 0.000000e+00 : f32
    %46 = vector.broadcast %cst_17 : f32 to vector<6x296xf32>
    %47 = tpu.concatenate %45, %46 in 0 : vector<2x296xf32>, vector<6x296xf32> -> vector<8x296xf32>
    %c0_18 = arith.constant 0 : index
    %c0_19 = arith.constant 0 : index
    %48 = vector.load %arg8[%c0_18, %c0_19] : memref<296x64xf32, #tpu.memory_space<vmem>>, vector<296x64xf32>
    %cst_20 = arith.constant dense<0.000000e+00> : vector<8x64xf32>
    %49 = tpu.matmul %47, %48, %cst_20 {dimension_numbers = #tpu.dot_dimension_numbers<[1], [0], [0], [1], [0, 0, 1, 1], [], []>} : vector<8x296xf32>, vector<296x64xf32>, vector<8x64xf32> -> vector<8x64xf32>
    %c0_21 = arith.constant 0 : index
    %c0_22 = arith.constant 0 : index
    %50 = vector.load %arg9[%c0_21, %c0_22] : memref<1x64xf32, #tpu.memory_space<vmem>>, vector<1x64xf32>
    %51 = vector.broadcast %50 : vector<1x64xf32> to vector<8x64xf32>
    %52 = arith.addf %49, %51 : vector<8x64xf32>
    %c0_23 = arith.constant 0 : index
    %c0_24 = arith.constant 0 : index
    %53 = vector.load %arg10[%c0_23, %c0_24] : memref<64x128xf32, #tpu.memory_space<vmem>>, vector<64x128xf32>
    %cst_25 = arith.constant dense<0.000000e+00> : vector<8x128xf32>
    %54 = tpu.matmul %52, %53, %cst_25 {dimension_numbers = #tpu.dot_dimension_numbers<[1], [0], [0], [1], [0, 0, 1, 1], [], []>} : vector<8x64xf32>, vector<64x128xf32>, vector<8x128xf32> -> vector<8x128xf32>
    %c0_26 = arith.constant 0 : index
    %c0_27 = arith.constant 0 : index
    %55 = vector.load %arg11[%c0_26, %c0_27] : memref<1x128xf32, #tpu.memory_space<vmem>>, vector<1x128xf32>
    %56 = vector.broadcast %55 : vector<1x128xf32> to vector<8x128xf32>
    %57 = arith.addf %54, %56 : vector<8x128xf32>
    %c0_28 = arith.constant 0 : index
    %c0_29 = arith.constant 0 : index
    %58 = vector.load %arg12[%c0_28, %c0_29] : memref<8x128xf32, #tpu.memory_space<vmem>>, vector<8x128xf32>
    tpu.vector_store %arg12[%c0_28, %c0_29], %57 {strides = array<i32>} : memref<8x128xf32, #tpu.memory_space<vmem>>, vector<8x128xf32>,
    return
  }
  func.func @transform_0(%arg0: i32) -> (i32, i32) {
    %c0_i32 = arith.constant 0 : i32
    %c0_i32_0 = arith.constant 0 : i32
    %c0_i32_1 = arith.constant 0 : i32
    return %c0_i32, %c0_i32_0 : i32, i32
  }
  func.func @transform_1(%arg0: i32) -> (i32, i32) {
    %c0_i32 = arith.constant 0 : i32
    %c0_i32_0 = arith.constant 0 : i32
    %c0_i32_1 = arith.constant 0 : i32
    return %c0_i32, %c0_i32_0 : i32, i32
  }
  func.func @transform_2(%arg0: i32) -> (i32, i32) {
    %c0_i32 = arith.constant 0 : i32
    %c0_i32_0 = arith.constant 0 : i32
    %c0_i32_1 = arith.constant 0 : i32
    return %c0_i32, %c0_i32_0 : i32, i32
  }
  func.func @transform_3(%arg0: i32) -> (i32, i32) {
    %c0_i32 = arith.constant 0 : i32
    %c0_i32_0 = arith.constant 0 : i32
    %c0_i32_1 = arith.constant 0 : i32
    return %c0_i32, %c0_i32_0 : i32, i32
  }
  func.func @transform_4(%arg0: i32) -> (i32, i32) {
    %c0_i32 = arith.constant 0 : i32
    %c0_i32_0 = arith.constant 0 : i32
    %c0_i32_1 = arith.constant 0 : i32
    return %c0_i32, %c0_i32_0 : i32, i32
  }
  func.func @transform_5(%arg0: i32) -> (i32, i32) {
    %c0_i32 = arith.constant 0 : i32
    %c0_i32_0 = arith.constant 0 : i32
    %c0_i32_1 = arith.constant 0 : i32
    return %c0_i32, %c0_i32_0 : i32, i32
  }
  func.func @transform_6(%arg0: i32) -> (i32, i32) {
    %c0_i32 = arith.constant 0 : i32
    %c0_i32_0 = arith.constant 0 : i32
    %c0_i32_1 = arith.constant 0 : i32
    return %c0_i32, %c0_i32_0 : i32, i32
  }
  func.func @transform_7(%arg0: i32) -> (i32, i32) {
    %c0_i32 = arith.constant 0 : i32
    %c0_i32_0 = arith.constant 0 : i32
    %c0_i32_1 = arith.constant 0 : i32
    return %c0_i32, %c0_i32_0 : i32, i32
  }
  func.func @transform_8(%arg0: i32) -> (i32, i32) {
    %c0_i32 = arith.constant 0 : i32
    %c0_i32_0 = arith.constant 0 : i32
    %c0_i32_1 = arith.constant 0 : i32
    return %c0_i32, %c0_i32_0 : i32, i32
  }
  func.func @transform_9(%arg0: i32) -> (i32, i32) {
    %c0_i32 = arith.constant 0 : i32
    %c0_i32_0 = arith.constant 0 : i32
    %c0_i32_1 = arith.constant 0 : i32
    return %c0_i32, %c0_i32_0 : i32, i32
  }
  func.func @transform_10(%arg0: i32) -> (i32, i32) {
    %c0_i32 = arith.constant 0 : i32
    %c0_i32_0 = arith.constant 0 : i32
    %c0_i32_1 = arith.constant 0 : i32
    return %c0_i32, %c0_i32_0 : i32, i32
  }
  func.func @transform_11(%arg0: i32) -> (i32, i32) {
    %c0_i32 = arith.constant 0 : i32
    %c0_i32_0 = arith.constant 0 : i32
    %c0_i32_1 = arith.constant 0 : i32
    return %c0_i32, %c0_i32_0 : i32, i32
  }
}

</mosaic_0001>

<bundles_post_ra>
// kernel: vision_network_forward_and_value.1
= control target key start
LH: loop header
LB: loop body
LE: loop exit
PB: predicated region body
PF: predicated region fallthrough
CT: control target
= control target key end

     0   :  { %vm69_vm0 = vcmask 523264   ;;  %s2084_s24 = smov 16   ;;  %s2085_s19 = smov 32   ;;  %vm848_vm1 = vcmask 130048   ;;  %vm852_vm2 = vcmask 261120   ;;  %vm856_vm3 = vcmask 392192   ;;  %s2758_s3 = inlined_call_operand.vmem [shape: f32[64,16], index: 3, kind: input, shape index: {}]   ;;  %s2759_s0 = inlined_call_operand.vmem [shape: f32[128,64], index: 0, kind: input, shape index: {}]   ;;  %s2760_s2 = inlined_call_operand.vmem [shape: bf16[384,128], index: 2, kind: input, shape index: {}]   ;;  %s2761_s4 = inlined_call_operand.vmem [shape: f32[1,16], index: 4, kind: input, shape index: {}]   ;;  %s2762_s5 = inlined_call_operand.vmem [shape: f32[256,32], index: 5, kind: input, shape index: {}]   ;;  %s2763_s7 = inlined_call_operand.vmem [shape: f32[296,64], index: 7, kind: input, shape index: {}]   ;;  %s2764_s6 = inlined_call_operand.vmem [shape: f32[1,32], index: 6, kind: input, shape index: {}]   ;;  %s2765_s1 = inlined_call_operand.vmem [shape: f32[2,8], index: 1, kind: input, shape index: {}]   ;;  %s2766_s9 = inlined_call_operand.vmem [shape: f32[64,128], index: 9, kind: input, shape index: {}]   ;;  %s2767_s8 = inlined_call_operand.vmem [shape: f32[1,64], index: 8, kind: input, shape index: {}]   ;;  %s2768_s10 = inlined_call_operand.vmem [shape: f32[1,128], index: 10, kind: input, shape index: {}]   ;;  %s2769_s11 = inlined_call_operand.vmem [shape: f32[8,128], index: 11, kind: output, shape index: {}]  }
   0x1   :  { %v54_v0 = vld [vmem:[%s2758_s3] sm:$0xff]  ;;  %v55_v1 = vld [vmem:[%s2758_s3 + $0x8] sm:$0xff]  ;;  %v56_v2 = vld [vmem:[%s2758_s3 + $0x10] sm:$0xff]  ;;  %s2086_s28 = smov 48   ;;  %s2087_s23 = smov 64   ;;  %vm863_vm4 = vcmask 654336  }
   0x2   :  { %v1839_v3 = vpack.c.bf16 %v55_v1, %v54_v0  ;;  %v57_v4 = vld [vmem:[%s2758_s3 + $0x18] sm:$0xff]  ;;  %v58_v6 = vld [vmem:[%s2758_s3 + $0x20] sm:$0xff]  ;;  %v59_v7 = vld [vmem:[%s2758_s3 + $0x28] sm:$0xff]  ;;  %s2088_s12 = smov 80   ;;  %s2090_s13 = smov 112   ;;  %vm867_vm5 = vcmask 785408  }
   0x3   :  { %v1843_v5 = vpack.c.bf16 %v57_v4, %v56_v2  ;;  %v38_v8 = vld [vmem:[%s2759_s0] sm:$0xff]  ;;  %v1847_v9 = vpack.c.bf16 %v59_v7, %v58_v6  ;;  %v60_v10 = vld [vmem:[%s2758_s3 + $0x30] sm:$0xff]  ;;  %v61_v11 = vld [vmem:[%s2758_s3 + $0x38] sm:$0xff]  ;;  %vm871_vm6 = vcmask 916480   ;;  %vm1056_vm7 = vcmask 1041408  }
   0x4   :  { %1840 = vmatprep.subr.bf16.mxu0 %v1839_v3  ;;  %1679 = vmatprep.mubr.msk.f32.mxu0 %vm69_vm0, %v38_v8  ;;  %v1851_v12 = vpack.c.bf16 %v61_v11, %v60_v10  ;;  %v39_v13 = vld [vmem:[%s2759_s0 + $0x8] sm:$0xff]  ;;  %v40_v14 = vld [vmem:[%s2759_s0 + $0x10] sm:$0xff]  ;;  %v41_v15 = vld [vmem:[%s2759_s0 + $0x18] sm:$0xff]  ;;  %vm2092_vm8 = vmmov 0   ;;  %vm1104_vm9 = vcmask 326656  }
   0x5   :  { %1842 = vmatpush3.bf16.msra.mxu0 %v1839_v3  ;;  %v42_v16 = vld [vmem:[%s2759_s0 + $0x20] sm:$0xff]  ;;  %v43_v17 = vld [vmem:[%s2759_s0 + $0x28] sm:$0xff]  ;;  %v44_v18 = vld [vmem:[%s2759_s0 + $0x30] sm:$0xff] }
   0x6   :  { %1844 = vmatprep.subr.bf16.mxu0 %v1843_v5  ;;  %v45_v19 = vld [vmem:[%s2759_s0 + $0x38] sm:$0xff]  ;;  %v46_v20 = vld [vmem:[%s2759_s0 + $0x40] sm:$0xff]  ;;  %v47_v21 = vld [vmem:[%s2759_s0 + $0x48] sm:$0xff] }
   0x7   :  { %v48_v22 = vld [vmem:[%s2759_s0 + $0x50] sm:$0xff]  ;;  %v49_v23 = vld [vmem:[%s2759_s0 + $0x58] sm:$0xff]  ;;  %v50_v24 = vld [vmem:[%s2759_s0 + $0x60] sm:$0xff] }
   0x8   :  { %v51_v25 = vld [vmem:[%s2759_s0 + $0x68] sm:$0xff]  ;;  %v52_v26 = vld [vmem:[%s2759_s0 + $0x70] sm:$0xff]  ;;  %v53_v27 = vld [vmem:[%s2759_s0 + $0x78] sm:$0xff] }
   0x9   :  { %1846 = vmatpush3.bf16.msra.mxu0 %v1843_v5  ;;  %v2245_v28 = vld [vmem:[%s2760_s2] sm:$0xff]  }
   0xa   :  { %1848 = vmatprep.subr.bf16.mxu0 %v1847_v9  ;;  %v1367_v29 = vunpack.c.l.bf16 %v2245_v28  ;;  %v2251_v30 = vld [vmem:[%s2761_s4] ss:$0 sm:$0xff] }
   0xc   :  { %1735 = vmatprep.mubr.f32.mxu1 %v1367_v29 }
   0xd   :  { %1850 = vmatpush3.bf16.msra.mxu0 %v1847_v9 }
   0xe   :  { %1852 = vmatprep.subr.bf16.mxu0 %v1851_v12 }
  0x11   :  { %1854 = vmatpush3.bf16.msra.mxu0 %v1851_v12 }
  0x14   :  { %1680 = vmatmul.mubr.msk.f32.vlgmr.msra.gmra.mrb[0].mxu0 %vm69_vm0, %v39_v13 }
  0x15   :  { %1682 = vmatprep.mubr.msk.f32.mxu0 %vm69_vm0, %v40_v14 }
  0x18   :  { %1683 = vmatmul.mubr.msk.f32.gmra.mrb[2].mxu0 %vm69_vm0, %v41_v15 }
  0x19   :  { %1685 = vmatprep.mubr.msk.f32.mxu0 %vm69_vm0, %v42_v16 }
  0x1c   :  { %1686 = vmatmul.mubr.msk.f32.gmra.mrb[4].mxu0 %vm69_vm0, %v43_v17 }
  0x1d   :  { %1688 = vmatprep.mubr.msk.f32.mxu0 %vm69_vm0, %v44_v18 }
  0x20   :  { %1689 = vmatmul.mubr.msk.f32.gmra.mrb[6].mxu0 %vm69_vm0, %v45_v19 }
  0x21   :  { %1691 = vmatprep.mubr.msk.f32.mxu0 %vm69_vm0, %v46_v20 }
  0x24   :  { %1692 = vmatmul.mubr.msk.f32.gmra.mrb[8].mxu0 %vm69_vm0, %v47_v21 }
  0x25   :  { %1694 = vmatprep.mubr.msk.f32.mxu0 %vm69_vm0, %v48_v22 }
  0x28   :  { %1695 = vmatmul.mubr.msk.f32.gmra.mrb[10].mxu0 %vm69_vm0, %v49_v23  ;;  %v1461_v23 = vld [vmem:[%s2760_s2 + $0x8] sm:$0xff]  }
  0x29   :  { %1697 = vmatprep.mubr.msk.f32.mxu0 %vm69_vm0, %v50_v24  ;;  %v1368_v24 = vunpack.c.h.bf16 %v2245_v28  ;;  %v1464_v28 = vld [vmem:[%s2760_s2 + $0x20] sm:$0xff]  }
  0x2c   :  { %1698 = vmatmul.mubr.msk.f32.gmra.mrb[12].mxu0 %vm69_vm0, %v51_v25  ;;  %v1371_v25 = vunpack.c.l.bf16 %v1461_v23 }
  0x2d   :  { %1700 = vmatprep.mubr.msk.f32.mxu0 %vm69_vm0, %v52_v26  ;;  %v1462_v26 = vld [vmem:[%s2760_s2 + $0x10] sm:$0xff]  }
  0x2e   :  { %v1375_v29 = vunpack.c.l.bf16 %v1462_v26 }
  0x30   :  { %1701 = vmatmul.mubr.msk.f32.gmra.mrb[14].mxu0 %vm69_vm0, %v53_v27  ;;  %v1372_v27 = vunpack.c.h.bf16 %v1461_v23 }
  0xe7   :  { %v1681_v31 = vpop.f32.mrb[0].mxu0 }
  0xe8   :  { %v190_v32 = vadd.f32 %v1681_v31, %v2251_v30  ;;  %v184_v33 = vpop.f32.mrb[1].mxu0  ;;  %v1376_v31 = vunpack.c.h.bf16 %v1462_v26 }
  0xe9   :  { %v185_v34 = vadd.f32 %v2251_v30, %v184_v33 }
  0xea   :  { %v264_v35 = vmax.f32 %v190_v32, 0.0 }
  0xeb   :  { %v263_v36 = vmax.f32 %v185_v34, 0.0  ;;  %v1684_v37 = vpop.f32.mrb[2].mxu0  ;;  %v1383_v34 = vunpack.c.l.bf16 %v1464_v28 }
  0xec   :  { %v200_v38 = vadd.f32 %v1684_v37, %v2251_v30  ;;  %v194_v39 = vpop.f32.mrb[3].mxu0 }
  0xed   :  { %v195_v40 = vadd.f32 %v2251_v30, %v194_v39  ;;  %v1855_v41 = vpack.c.bf16 %v264_v35, %v263_v36  ;;  %v1465_v35 = vld [vmem:[%s2760_s2 + $0x28] sm:$0xff]   ;;  %v1384_v36 = vunpack.c.h.bf16 %v1464_v28 }
  0xee   :  { %v266_v42 = vmax.f32 %v200_v38, 0.0  ;;  %v1387_v37 = vunpack.c.l.bf16 %v1465_v35  ;;  %v1466_v38 = vld [vmem:[%s2760_s2 + $0x30] sm:$0xff]   ;;  %v1388_v39 = vunpack.c.h.bf16 %v1465_v35 }
  0xef   :  { %v265_v43 = vmax.f32 %v195_v40, 0.0  ;;  %v1687_v44 = vpop.f32.mrb[4].mxu0  ;;  %1856 = vmatprep.subr.bf16.mxu1 %v1855_v41  ;;  %v1391_v40 = vunpack.c.l.bf16 %v1466_v38 }
  0xf0   :  { %v210_v45 = vadd.f32 %v1687_v44, %v2251_v30  ;;  %v204_v46 = vpop.f32.mrb[5].mxu0  ;;  %1858 = vmatpush3.bf16.msra.mxu1 %v1855_v41  ;;  %v1467_v41 = vld [vmem:[%s2760_s2 + $0x38] sm:$0xff]   ;;  %v1468_v44 = vld [vmem:[%s2760_s2 + $0x40] sm:$0xff]  }
  0xf1   :  { %v1859_v47 = vpack.c.bf16 %v266_v42, %v265_v43  ;;  %v205_v48 = vadd.f32 %v2251_v30, %v204_v46  ;;  %v1392_v42 = vunpack.c.h.bf16 %v1466_v38  ;;  %v1395_v43 = vunpack.c.l.bf16 %v1467_v41 }
  0xf2   :  { %v268_v49 = vmax.f32 %v210_v45, 0.0  ;;  %v1396_v45 = vunpack.c.h.bf16 %v1467_v41  ;;  %v1399_v46 = vunpack.c.l.bf16 %v1468_v44 }
  0xf3   :  { %v267_v50 = vmax.f32 %v205_v48, 0.0  ;;  %v1690_v51 = vpop.f32.mrb[6].mxu0  ;;  %1860 = vmatprep.subr.bf16.mxu1 %v1859_v47  ;;  %v1400_v48 = vunpack.c.h.bf16 %v1468_v44 }
  0xf4   :  { %v220_v52 = vadd.f32 %v1690_v51, %v2251_v30  ;;  %v214_v53 = vpop.f32.mrb[7].mxu0  ;;  %1862 = vmatpush3.bf16.msra.mxu1 %v1859_v47  ;;  %v1469_v47 = vld [vmem:[%s2760_s2 + $0x48] sm:$0xff]  }
  0xf5   :  { %v1863_v54 = vpack.c.bf16 %v268_v49, %v267_v50  ;;  %v215_v55 = vadd.f32 %v2251_v30, %v214_v53  ;;  %v1403_v49 = vunpack.c.l.bf16 %v1469_v47  ;;  %v1470_v50 = vld [vmem:[%s2760_s2 + $0x50] sm:$0xff]   ;;  %v1404_v51 = vunpack.c.h.bf16 %v1469_v47  ;;  %v1471_v53 = vld [vmem:[%s2760_s2 + $0x58] sm:$0xff]  }
  0xf6   :  { %v270_v56 = vmax.f32 %v220_v52, 0.0  ;;  %v1407_v52 = vunpack.c.l.bf16 %v1470_v50 }
  0xf7   :  { %v269_v57 = vmax.f32 %v215_v55, 0.0  ;;  %v1693_v58 = vpop.f32.mrb[8].mxu0  ;;  %1864 = vmatprep.subr.bf16.mxu1 %v1863_v54  ;;  %v1411_v55 = vunpack.c.l.bf16 %v1471_v53 }
  0xf8   :  { %v230_v59 = vadd.f32 %v1693_v58, %v2251_v30  ;;  %v224_v60 = vpop.f32.mrb[9].mxu0  ;;  %1866 = vmatpush3.bf16.msra.mxu1 %v1863_v54  ;;  %v1408_v54 = vunpack.c.h.bf16 %v1470_v50 }
  0xf9   :  { %v1867_v61 = vpack.c.bf16 %v270_v56, %v269_v57  ;;  %v225_v62 = vadd.f32 %v2251_v30, %v224_v60  ;;  %v1472_v56 = vld [vmem:[%s2760_s2 + $0x60] sm:$0xff]   ;;  %v1412_v57 = vunpack.c.h.bf16 %v1471_v53 }
  0xfa   :  { %v272_v63 = vmax.f32 %v230_v59, 0.0  ;;  %v1415_v58 = vunpack.c.l.bf16 %v1472_v56  ;;  %v1473_v59 = vld [vmem:[%s2760_s2 + $0x68] sm:$0xff]   ;;  %v1416_v60 = vunpack.c.h.bf16 %v1472_v56 }
  0xfb   :  { %v271_v0 = vmax.f32 %v225_v62, 0.0  ;;  %v1696_v1 = vpop.f32.mrb[10].mxu0  ;;  %1868 = vmatprep.subr.bf16.mxu1 %v1867_v61  ;;  %v1474_v62 = vld [vmem:[%s2760_s2 + $0x70] sm:$0xff]  }
  0xfc   :  { %v240_v2 = vadd.f32 %v1696_v1, %v2251_v30  ;;  %v234_v3 = vpop.f32.mrb[11].mxu0  ;;  %1870 = vmatpush3.bf16.msra.mxu1 %v1867_v61  ;;  %v1419_v61 = vunpack.c.l.bf16 %v1473_v59  ;;  %v1475_v1 = vld [vmem:[%s2760_s2 + $0x78] sm:$0xff]  }
  0xfd   :  { %v1871_v4 = vpack.c.bf16 %v272_v63, %v271_v0  ;;  %v235_v5 = vadd.f32 %v2251_v30, %v234_v3  ;;  %v1420_v63 = vunpack.c.h.bf16 %v1473_v59  ;;  %v1423_v0 = vunpack.c.l.bf16 %v1474_v62  ;;  %v897_v59 = vld [vmem:[%s2762_s5 + $0x8] sm:$0xff] }
  0xfe   :  { %v274_v6 = vmax.f32 %v240_v2, 0.0  ;;  %v1424_v2 = vunpack.c.h.bf16 %v1474_v62  ;;  %v1427_v3 = vunpack.c.l.bf16 %v1475_v1  ;;  %v914_v62 = vld [vmem:[%s2762_s5 + $0x90] sm:$0xff] }
  0xff   :  { %v273_v7 = vmax.f32 %v235_v5, 0.0  ;;  %v1699_v8 = vpop.f32.mrb[12].mxu0  ;;  %1872 = vmatprep.subr.bf16.mxu1 %v1871_v4  ;;  %v1428_v5 = vunpack.c.h.bf16 %v1475_v1 }
 0x100   :  { %v250_v9 = vadd.f32 %v1699_v8, %v2251_v30  ;;  %v244_v10 = vpop.f32.mrb[13].mxu0  ;;  %1874 = vmatpush3.bf16.msra.mxu1 %v1871_v4  ;;  %v1476_v4 = vld [vmem:[%s2760_s2 + $0x80] sm:$0xff]  }
 0x101   :  { %v1875_v11 = vpack.c.bf16 %v274_v6, %v273_v7  ;;  %v245_v12 = vadd.f32 %v2251_v30, %v244_v10  ;;  %v1431_v6 = vunpack.c.l.bf16 %v1476_v4  ;;  %v1477_v7 = vld [vmem:[%s2760_s2 + $0x88] sm:$0xff]   ;;  %v1432_v8 = vunpack.c.h.bf16 %v1476_v4  ;;  %v1478_v10 = vld [vmem:[%s2760_s2 + $0x90] sm:$0xff]   ;;  %v899_v4 = vld [vmem:[%s2762_s5 + $0x18] sm:$0xff] }
 0x102   :  { %v276_v13 = vmax.f32 %v250_v9, 0.0  ;;  %v1435_v9 = vunpack.c.l.bf16 %v1477_v7 }
 0x103   :  { %v275_v14 = vmax.f32 %v245_v12, 0.0  ;;  %v1702_v15 = vpop.f32.mrb[14].mxu0  ;;  %1876 = vmatprep.subr.bf16.mxu1 %v1875_v11  ;;  %v1439_v12 = vunpack.c.l.bf16 %v1478_v10 }
 0x104   :  { %v260_v16 = vadd.f32 %v1702_v15, %v2251_v30  ;;  %v254_v17 = vpop.f32.mrb[15].mxu0  ;;  %1878 = vmatpush3.bf16.msra.mxu1 %v1875_v11  ;;  %v1436_v11 = vunpack.c.h.bf16 %v1477_v7  ;;  %v916_v7 = vld [vmem:[%s2762_s5 + $0xa0] sm:$0xff] }
 0x105   :  { %v1879_v18 = vpack.c.bf16 %v276_v13, %v275_v14  ;;  %v255_v19 = vadd.f32 %v2251_v30, %v254_v17  ;;  %v1463_v30 = vld [vmem:[%s2760_s2 + $0x18] sm:$0xff]   ;;  %v1440_v14 = vunpack.c.h.bf16 %v1478_v10 }
 0x106   :  { %v278_v20 = vmax.f32 %v260_v16, 0.0  ;;  %v1379_v32 = vunpack.c.l.bf16 %v1463_v30  ;;  %v1380_v33 = vunpack.c.h.bf16 %v1463_v30  ;;  %v1479_v13 = vld [vmem:[%s2760_s2 + $0x98] sm:$0xff]   ;;  %v1480_v16 = vld [vmem:[%s2760_s2 + $0xa0] sm:$0xff]  }
 0x107   :  { %v277_v21 = vmax.f32 %v255_v19, 0.0  ;;  %1880 = vmatprep.subr.bf16.mxu1 %v1879_v18  ;;  %v1443_v15 = vunpack.c.l.bf16 %v1479_v13  ;;  %v1444_v17 = vunpack.c.h.bf16 %v1479_v13  ;;  %v1481_v19 = vld [vmem:[%s2760_s2 + $0xa8] sm:$0xff]  }
 0x108   :  { %1882 = vmatpush3.bf16.msra.mxu1 %v1879_v18  ;;  %v1447_v18 = vunpack.c.l.bf16 %v1480_v16  ;;  %v1452_v23 = vunpack.c.h.bf16 %v1481_v19  ;;  %v901_v13 = vld [vmem:[%s2762_s5 + $0x28] sm:$0xff] }
 0x109   :  { %v1883_v22 = vpack.c.bf16 %v278_v20, %v277_v21  ;;  %v1448_v20 = vunpack.c.h.bf16 %v1480_v16  ;;  %v1451_v21 = vunpack.c.l.bf16 %v1481_v19 }
 0x10b   :  { %1884 = vmatprep.subr.bf16.mxu1 %v1883_v22 }
 0x10c   :  { %1886 = vmatpush3.bf16.msra.mxu1 %v1883_v22  ;;  %v1482_v22 = vld [vmem:[%s2760_s2 + $0xb0] sm:$0xff]  }
 0x10d   :  { %v1456_v26 = vunpack.c.h.bf16 %v1482_v22 }
 0x10f   :  { %1736 = vmatmul.mubr.f32.vlgmr.msra.gmra.mrb[0].mxu1 %v1368_v24  ;;  %v1455_v24 = vunpack.c.l.bf16 %v1482_v22  ;;  %v902_v22 = vld [vmem:[%s2762_s5 + $0x30] sm:$0xff] }
 0x110   :  { %1738 = vmatprep.mubr.f32.mxu1 %v1371_v25  ;;  %v1483_v25 = vld [vmem:[%s2760_s2 + $0xb8] sm:$0xff]  }
 0x113   :  { %1739 = vmatmul.mubr.f32.gmra.mrb[2].mxu1 %v1372_v27  ;;  %v1459_v27 = vunpack.c.l.bf16 %v1483_v25 }
 0x114   :  { %1741 = vmatprep.mubr.f32.mxu1 %v1375_v29  ;;  %v1460_v29 = vunpack.c.h.bf16 %v1483_v25 }
 0x117   :  { %1742 = vmatmul.mubr.f32.gmra.mrb[4].mxu1 %v1376_v31 }
 0x118   :  { %1744 = vmatprep.mubr.f32.mxu1 %v1379_v32 }
 0x11b   :  { %1745 = vmatmul.mubr.f32.gmra.mrb[6].mxu1 %v1380_v33 }
 0x11c   :  { %1747 = vmatprep.mubr.f32.mxu1 %v1383_v34 }
 0x11f   :  { %1748 = vmatmul.mubr.f32.gmra.mrb[8].mxu1 %v1384_v36 }
 0x120   :  { %1750 = vmatprep.mubr.f32.mxu1 %v1387_v37 }
 0x123   :  { %1751 = vmatmul.mubr.f32.gmra.mrb[10].mxu1 %v1388_v39 }
 0x124   :  { %1753 = vmatprep.mubr.f32.mxu1 %v1391_v40 }
 0x127   :  { %1754 = vmatmul.mubr.f32.gmra.mrb[12].mxu1 %v1392_v42 }
 0x128   :  { %1756 = vmatprep.mubr.f32.mxu1 %v1395_v43 }
 0x12b   :  { %1757 = vmatmul.mubr.f32.gmra.mrb[14].mxu1 %v1396_v45 }
 0x12c   :  { %1759 = vmatprep.mubr.f32.mxu1 %v1399_v46 }
 0x12f   :  { %1760 = vmatmul.mubr.f32.gmra.mrb[16].mxu1 %v1400_v48 }
 0x130   :  { %1762 = vmatprep.mubr.f32.mxu1 %v1403_v49 }
 0x133   :  { %1763 = vmatmul.mubr.f32.gmra.mrb[18].mxu1 %v1404_v51 }
 0x134   :  { %1765 = vmatprep.mubr.f32.mxu1 %v1407_v52 }
 0x137   :  { %1766 = vmatmul.mubr.f32.gmra.mrb[20].mxu1 %v1408_v54  ;;  %v912_v54 = vld [vmem:[%s2762_s5 + $0x80] sm:$0xff] }
 0x138   :  { %1768 = vmatprep.mubr.f32.mxu1 %v1411_v55  ;;  %v913_v55 = vld [vmem:[%s2762_s5 + $0x88] sm:$0xff] }
 0x13b   :  { %1769 = vmatmul.mubr.f32.gmra.mrb[22].mxu1 %v1412_v57  ;;  %v1887_v57 = vpack.c.bf16 %v913_v55, %v912_v54  ;;  %v905_v54 = vld [vmem:[%s2762_s5 + $0x48] sm:$0xff] }
 0x13c   :  { %1771 = vmatprep.mubr.f32.mxu1 %v1415_v58  ;;  %v896_v58 = vld [vmem:[%s2762_s5] sm:$0xff] }
 0x13d   :  { %1888 = vmatprep.subr.bf16.mxu0 %v1887_v57 }
 0x13f   :  { %1772 = vmatmul.mubr.f32.gmra.mrb[24].mxu1 %v1416_v60  ;;  %v1889_v60 = vpack.c.bf16 %v897_v59, %v896_v58  ;;  %v922_v58 = vld [vmem:[%s2762_s5 + $0xd0] sm:$0xff]  ;;  %v923_v59 = vld [vmem:[%s2762_s5 + $0xd8] sm:$0xff] }
 0x140   :  { %1774 = vmatprep.mubr.f32.mxu1 %v1419_v61 }
 0x141   :  { %1890 = vmatpush3.bf16.msra.mxu0 %v1889_v60 }
 0x143   :  { %1775 = vmatmul.mubr.f32.gmra.mrb[26].mxu1 %v1420_v63  ;;  %v915_v63 = vld [vmem:[%s2762_s5 + $0x98] sm:$0xff] }
 0x144   :  { %1777 = vmatprep.mubr.f32.mxu1 %v1423_v0 }
 0x147   :  { %1778 = vmatmul.mubr.f32.gmra.mrb[28].mxu1 %v1424_v2  ;;  %v1891_v2 = vpack.c.bf16 %v915_v63, %v914_v62  ;;  %v1907_v62 = vpack.c.bf16 %v923_v59, %v922_v58  ;;  %v906_v63 = vld [vmem:[%s2762_s5 + $0x50] sm:$0xff] }
 0x148   :  { %1780 = vmatprep.mubr.f32.mxu1 %v1427_v3  ;;  %v898_v3 = vld [vmem:[%s2762_s5 + $0x10] sm:$0xff] }
 0x149   :  { %1892 = vmatprep.subr.bf16.mxu0 %v1891_v2 }
 0x14b   :  { %1781 = vmatmul.mubr.f32.gmra.mrb[30].mxu1 %v1428_v5  ;;  %v1893_v5 = vpack.c.bf16 %v899_v4, %v898_v3 }
 0x14c   :  { %1783 = vmatprep.mubr.f32.mxu1 %v1431_v6 }
 0x14d   :  { %1894 = vmatpush3.bf16.msra.mxu0 %v1893_v5  ;;  %v925_v5 = vld [vmem:[%s2762_s5 + $0xe8] sm:$0xff] }
 0x14f   :  { %1784 = vmatmul.mubr.f32.gmra.mrb[32].mxu1 %v1432_v8  ;;  %v917_v8 = vld [vmem:[%s2762_s5 + $0xa8] sm:$0xff] }
 0x150   :  { %1786 = vmatprep.mubr.f32.mxu1 %v1435_v9 }
 0x153   :  { %1787 = vmatmul.mubr.f32.gmra.mrb[34].mxu1 %v1436_v11  ;;  %v1895_v11 = vpack.c.bf16 %v917_v8, %v916_v7 }
 0x154   :  { %1789 = vmatprep.mubr.f32.mxu1 %v1439_v12  ;;  %v900_v12 = vld [vmem:[%s2762_s5 + $0x20] sm:$0xff] }
 0x155   :  { %1896 = vmatprep.subr.bf16.mxu0 %v1895_v11  ;;  %v909_v11 = vld [vmem:[%s2762_s5 + $0x68] sm:$0xff] }
 0x157   :  { %1790 = vmatmul.mubr.f32.gmra.mrb[36].mxu1 %v1440_v14 }
 0x158   :  { %1792 = vmatprep.mubr.f32.mxu1 %v1443_v15  ;;  %v1897_v15 = vpack.c.bf16 %v901_v13, %v900_v12 }
 0x15a   :  { %1898 = vmatpush3.bf16.msra.mxu0 %v1897_v15  ;;  %v927_v15 = vld [vmem:[%s2762_s5 + $0xf8] sm:$0xff] }
 0x15b   :  { %1793 = vmatmul.mubr.f32.gmra.mrb[38].mxu1 %v1444_v17  ;;  %v918_v17 = vld [vmem:[%s2762_s5 + $0xb0] sm:$0xff] }
 0x15c   :  { %1795 = vmatprep.mubr.f32.mxu1 %v1447_v18  ;;  %v919_v18 = vld [vmem:[%s2762_s5 + $0xb8] sm:$0xff] }
 0x15f   :  { %1796 = vmatmul.mubr.f32.gmra.mrb[40].mxu1 %v1448_v20 }
 0x160   :  { %1798 = vmatprep.mubr.f32.mxu1 %v1451_v21  ;;  %v1899_v21 = vpack.c.bf16 %v919_v18, %v918_v17  ;;  %v910_v18 = vld [vmem:[%s2762_s5 + $0x70] sm:$0xff] }
 0x162   :  { %1900 = vmatprep.subr.bf16.mxu0 %v1899_v21 }
 0x163   :  { %1799 = vmatmul.mubr.f32.gmra.mrb[42].mxu1 %v1452_v23  ;;  %v903_v23 = vld [vmem:[%s2762_s5 + $0x38] sm:$0xff] }
 0x164   :  { %1801 = vmatprep.mubr.f32.mxu1 %v1455_v24  ;;  %v1901_v25 = vpack.c.bf16 %v903_v23, %v902_v22 }
 0x166   :  { %1902 = vmatpush3.bf16.msra.mxu0 %v1901_v25 }
 0x167   :  { %1802 = vmatmul.mubr.f32.gmra.mrb[44].mxu1 %v1456_v26 }
 0x168   :  { %1804 = vmatprep.mubr.f32.mxu1 %v1459_v27  ;;  %v920_v27 = vld [vmem:[%s2762_s5 + $0xc0] sm:$0xff] }
 0x16b   :  { %1805 = vmatmul.mubr.f32.gmra.mrb[46].mxu1 %v1460_v29  ;;  %v921_v29 = vld [vmem:[%s2762_s5 + $0xc8] sm:$0xff] }
 0x1e2   :  { %v2339_v30 = vpop.f32.mrb[0].mxu1 }
 0x1e3   :  { %v2341_v31 = vpop.f32.mrb[1].mxu1 }
 0x1e6   :  { %v1740_v32 = vpop.f32.mrb[2].mxu1 }
 0x1e7   :  { %v2343_v28 = vpop.f32.mrb[3].mxu1 }
 0x1ea   :  { %v2345_v33 = vpop.f32.mrb[4].mxu1 }
 0x1eb   :  { %v461_v34 = vpop.f32.mrb[5].mxu1 }
 0x1ee   :  { %v2347_v35 = vpop.f32.mrb[6].mxu1 }
 0x1ef   :  { %v2349_v36 = vpop.f32.mrb[7].mxu1 }
 0x1f2   :  { %v2351_v37 = vpop.f32.mrb[8].mxu1 }
 0x1f3   :  { %v2353_v38 = vpop.f32.mrb[9].mxu1 }
 0x1f6   :  { %v2355_v39 = vpop.f32.mrb[10].mxu1 }
 0x1f7   :  { %v2357_v40 = vpop.f32.mrb[11].mxu1 }
 0x1fa   :  { %v2359_v41 = vpop.f32.mrb[12].mxu1 }
 0x1fb   :  { %v2361_v42 = vpop.f32.mrb[13].mxu1 }
 0x1fe   :  { %v2363_v43 = vpop.f32.mrb[14].mxu1 }
 0x1ff   :  { %v2365_v44 = vpop.f32.mrb[15].mxu1 }
 0x202   :  { %v2367_v45 = vpop.f32.mrb[16].mxu1 }
 0x203   :  { %v2369_v46 = vpop.f32.mrb[17].mxu1 }
 0x206   :  { %v2371_v47 = vpop.f32.mrb[18].mxu1 }
 0x207   :  { %v2373_v48 = vpop.f32.mrb[19].mxu1 }
 0x20a   :  { %v2375_v49 = vpop.f32.mrb[20].mxu1 }
 0x20b   :  { %v2377_v50 = vpop.f32.mrb[21].mxu1 }
 0x20e   :  { %v2379_v51 = vpop.f32.mrb[22].mxu1 }
 0x20f   :  { %v2381_v52 = vpop.f32.mrb[23].mxu1 }
 0x212   :  { %v2383_v53 = vpop.f32.mrb[24].mxu1 }
 0x213   :  { %v2391_v56 = vpop.f32.mrb[25].mxu1 }
 0x216   :  { %v1776_v61 = vpop.f32.mrb[26].mxu1 }
 0x217   :  { %v1979_v0 = vpack.i.bf16 %v1740_v32, %v1776_v61  ;;  %v2405_v1 = vpop.f32.mrb[27].mxu1 }
 0x219   :  { %1980 = vrot.lane.b32.xlu0 %v1979_v0, %s2084_s24  ;;  %v907_v0 = vld [vmem:[%s2762_s5 + $0x58] sm:$0xff] }
 0x21a   :  { %v2414_v6 = vpop.f32.mrb[28].mxu1  ;;  %v1909_v3 = vpack.c.bf16 %v907_v0, %v906_v63 }
 0x21b   :  { %v2049_v9 = vpack.i.bf16 %v2345_v33, %v2414_v6  ;;  %v581_v10 = vpop.f32.mrb[29].mxu1 }
 0x21c   :  { %v1984_v14 = vpack.i.bf16 %v461_v34, %v581_v10 }
 0x21e   :  { %1985 = vrot.lane.b32.xlu0 %v1984_v14, %s2084_s24  ;;  %v1782_v16 = vpop.f32.mrb[30].mxu1  ;;  %v926_v14 = vld [vmem:[%s2762_s5 + $0xf0] sm:$0xff] }
 0x21f   :  { %v1989_v19 = vpack.i.bf16 %v2347_v35, %v1782_v16  ;;  %v591_v20 = vpop.f32.mrb[31].mxu1  ;;  %v1903_v35 = vpack.c.bf16 %v921_v29, %v920_v27 }
 0x220   :  { %v1994_v24 = vpack.i.bf16 %v2349_v36, %v591_v20  ;;  %v904_v36 = vld [vmem:[%s2762_s5 + $0x40] sm:$0xff] }
 0x221   :  { %v1905_v57 = vpack.c.bf16 %v905_v54, %v904_v36  ;;  %1904 = vmatprep.subr.bf16.mxu0 %v1903_v35 }
 0x222   :  { %1990 = vrot.lane.b32.xlu0 %v1989_v19, %s2085_s19  ;;  %v1785_v26 = vpop.f32.mrb[32].mxu1  ;;  %v911_v19 = vld [vmem:[%s2762_s5 + $0x78] sm:$0xff] }
 0x223   :  { %v1999_v32 = vpack.i.bf16 %v2351_v37, %v1785_v26  ;;  %v2453_v34 = vpop.f32.mrb[33].mxu1  ;;  %1906 = vmatpush3.bf16.msra.mxu0 %v1905_v57  ;;  %v1917_v21 = vpack.c.bf16 %v911_v19, %v910_v18 }
 0x224   :  { %v2054_v55 = vpack.i.bf16 %v2353_v38, %v2453_v34  ;;  %1908 = vmatprep.subr.bf16.mxu0 %v1907_v62 }
 0x225   :  { %2000 = vrot.lane.b32.xlu1 %v1999_v32, %s2086_s28 }
 0x226   :  { %1995 = vrot.lane.b32.xlu0 %v1994_v24, %s2085_s19  ;;  %v2465_v37 = vpop.f32.mrb[34].mxu1 }
 0x227   :  { %v2059_v60 = vpack.i.bf16 %v2355_v39, %v2465_v37  ;;  %v611_v61 = vpop.f32.mrb[35].mxu1  ;;  %1910 = vmatpush3.bf16.msra.mxu0 %v1909_v3  ;;  %v924_v39 = vld [vmem:[%s2762_s5 + $0xe0] sm:$0xff] }
 0x228   :  { %v2004_v2 = vpack.i.bf16 %v2357_v40, %v611_v61  ;;  %v1911_v10 = vpack.c.bf16 %v925_v5, %v924_v39  ;;  %v908_v40 = vld [vmem:[%s2762_s5 + $0x60] sm:$0xff]  ;;  %s2089_s5 = smov 96  }
 0x229   :  { %v1913_v13 = vpack.c.bf16 %v909_v11, %v908_v40 }
 0x22a   :  { %2005 = vrot.lane.b32.xlu0 %v2004_v2, %s2086_s28  ;;  %v1791_v4 = vpop.f32.mrb[36].mxu1  ;;  %1912 = vmatprep.subr.bf16.mxu0 %v1911_v10 }
 0x22b   :  { %v2009_v7 = vpack.i.bf16 %v2359_v41, %v1791_v4  ;;  %v621_v8 = vpop.f32.mrb[37].mxu1  ;;  %1914 = vmatpush3.bf16.msra.mxu0 %v1913_v13 }
 0x22c   :  { %v2014_v12 = vpack.i.bf16 %v2361_v42, %v621_v8  ;;  %v1915_v42 = vpack.c.bf16 %v927_v15, %v926_v14 }
 0x22e   :  { %2010 = vrot.lane.b32.xlu0 %v2009_v7, %s2087_s23  ;;  %2015 = vrot.lane.b32.xlu1 %v2014_v12, %s2087_s23  ;;  %v1794_v41 = vpop.f32.mrb[38].mxu1 }
 0x22f   :  { %v2019_v16 = vpack.i.bf16 %v2363_v43, %v1794_v41  ;;  %v631_v17 = vpop.f32.mrb[39].mxu1  ;;  %1916 = vmatprep.subr.bf16.mxu0 %v1915_v42 }
 0x230   :  { %v2064_v20 = vpack.i.bf16 %v2365_v44, %v631_v17  ;;  %1918 = vmatpush3.bf16.msra.mxu0 %v1917_v21 }
 0x232   :  { %2020 = vrot.lane.b32.xlu1 %v2019_v16, %s2088_s12  ;;  %v1797_v22 = vpop.f32.mrb[40].mxu1 }
 0x233   :  { %v2069_v43 = vpack.i.bf16 %v2367_v45, %v1797_v22  ;;  %v641_v23 = vpop.f32.mrb[41].mxu1 }
 0x234   :  { %v2024_v24 = vpack.i.bf16 %v2369_v46, %v641_v23 }
 0x236   :  { %2025 = vrot.lane.b32.xlu1 %v2024_v24, %s2088_s12  ;;  %v1800_v25 = vpop.f32.mrb[42].mxu1 }
 0x237   :  { %v2029_v26 = vpack.i.bf16 %v2371_v47, %v1800_v25  ;;  %v651_v27 = vpop.f32.mrb[43].mxu1 }
 0x238   :  { %v2034_v29 = vpack.i.bf16 %v2373_v48, %v651_v27 }
 0x239   :  { %2030 = vrot.lane.b32.xlu0 %v2029_v26, %s2089_s5 }
 0x23a   :  { %2035 = vrot.lane.b32.xlu1 %v2034_v29, %s2089_s5  ;;  %v1803_v44 = vpop.f32.mrb[44].mxu1 }
 0x23b   :  { %v2039_v32 = vpack.i.bf16 %v2375_v49, %v1803_v44  ;;  %v661_v45 = vpop.f32.mrb[45].mxu1 }
 0x23c   :  { %v2074_v35 = vpack.i.bf16 %v2377_v50, %v661_v45 }
 0x23d   :  { %2050 = vrot.lane.b32.xlu0 %v2049_v9, %s2084_s24 }
 0x23e   :  { %2040 = vrot.lane.b32.xlu1 %v2039_v32, %s2090_s13  ;;  %v1806_v46 = vpop.f32.mrb[46].mxu1 }
 0x23f   :  { %v2079_v47 = vpack.i.bf16 %v2379_v51, %v1806_v46  ;;  %v671_v48 = vpop.f32.mrb[47].mxu1 }
 0x240   :  { %v2044_v36 = vpack.i.bf16 %v2381_v52, %v671_v48 }
 0x241   :  { %2060 = vrot.lane.b32.xlu0 %v2059_v60, %s2086_s28 }
 0x242   :  { %2045 = vrot.lane.b32.xlu1 %v2044_v36, %s2090_s13 }
 0x245   :  { %2070 = vrot.lane.b32.xlu0 %v2069_v43, %s2088_s12 }
 0x246   :  { %2055 = vrot.lane.b32.xlu1 %v2054_v55, %s2085_s19 }
 0x249   :  { %2080 = vrot.lane.b32.xlu0 %v2079_v47, %s2090_s13 }
 0x24a   :  { %2065 = vrot.lane.b32.xlu1 %v2064_v20, %s2087_s23 }
 0x24e   :  { %2075 = vrot.lane.b32.xlu1 %v2074_v35, %s2089_s5 }
 0x28b   :  { %v1981_v33 = vpop.permute.xlu0 %1980 }
 0x28c   :  { %v1983_v57 = vunpack.i.h.bf16 %v1981_v33  ;;  %v1982_v37 = vunpack.i.l.bf16 %v1981_v33 }
 0x28e   :  { %v849_v63 = vsel %vm848_vm1, %v2341_v31, %v1983_v57  ;;  %v875_v0 = vsel %vm848_vm1, %v2391_v56, %v1982_v37 }
 0x290   :  { %v1986_v49 = vpop.permute.xlu0 %1985 }
 0x291   :  { %v1988_v58 = vunpack.i.h.bf16 %v1986_v49  ;;  %v1987_v59 = vunpack.i.l.bf16 %v1986_v49 }
 0x293   :  { %v850_v2 = vsel %vm848_vm1, %v2339_v30, %v1988_v58  ;;  %v876_v3 = vsel %vm848_vm1, %v2383_v53, %v1987_v59 }
 0x294   :  { %v1991_v50 = vpop.permute.xlu0 %1990 }
 0x295   :  { %v1993_v61 = vunpack.i.h.bf16 %v1991_v50  ;;  %v1992_v62 = vunpack.i.l.bf16 %v1991_v50 }
 0x297   :  { %v2001_v6 = vpop.permute.xlu1 %2000  ;;  %v854_v56 = vsel %vm852_vm2, %v850_v2, %v1993_v61  ;;  %v879_v13 = vsel %vm852_vm2, %v876_v3, %v1992_v62 }
 0x298   :  { %v1996_v51 = vpop.permute.xlu0 %1995  ;;  %v2003_v10 = vunpack.i.h.bf16 %v2001_v6  ;;  %v2002_v40 = vunpack.i.l.bf16 %v2001_v6 }
 0x299   :  { %v1998_v38 = vunpack.i.h.bf16 %v1996_v51  ;;  %v1997_v34 = vunpack.i.l.bf16 %v1996_v51 }
 0x29b   :  { %v853_v4 = vsel %vm852_vm2, %v849_v63, %v1998_v38  ;;  %v878_v39 = vsel %vm852_vm2, %v875_v0, %v1997_v34 }
 0x29c   :  { %v2006_v9 = vpop.permute.xlu0 %2005  ;;  %v857_v30 = vsel %vm856_vm3, %v853_v4, %v2003_v10  ;;  %v881_v53 = vsel %vm856_vm3, %v878_v39, %v2002_v40 }
 0x29d   :  { %v2008_v15 = vunpack.i.h.bf16 %v2006_v9  ;;  %v2007_v16 = vunpack.i.l.bf16 %v2006_v9 }
 0x29f   :  { %v858_v45 = vsel %vm856_vm3, %v854_v56, %v2008_v15  ;;  %v882_v35 = vsel %vm856_vm3, %v879_v13, %v2007_v16 }
 0x2a0   :  { %v2016_v52 = vpop.permute.xlu1 %2015  ;;  %v2011_v55 = vpop.permute.xlu0 %2010 }
 0x2a1   :  { %v2018_v5 = vunpack.i.h.bf16 %v2016_v52  ;;  %v2017_v7 = vunpack.i.l.bf16 %v2016_v52  ;;  %v2013_v19 = vunpack.i.h.bf16 %v2011_v55  ;;  %v2012_v20 = vunpack.i.l.bf16 %v2011_v55 }
 0x2a3   :  { %v860_v17 = vsel %vm69_vm0, %v857_v30, %v2018_v5  ;;  %v884_v42 = vsel %vm69_vm0, %v881_v53, %v2017_v7  ;;  %v861_v36 = vsel %vm69_vm0, %v858_v45, %v2013_v19  ;;  %v885_v33 = vsel %vm69_vm0, %v882_v35, %v2012_v20  ;;  %v1060_v19 = vld [vmem:[%s2763_s7] sm:$0xff]  ;;  %v1065_v35 = vld [vmem:[%s2763_s7 + $0x28] sm:$0xff] }
 0x2a4   :  { %v2021_v54 = vpop.permute.xlu1 %2020  ;;  %v1064_v45 = vld [vmem:[%s2763_s7 + $0x20] sm:$0xff] }
 0x2a5   :  { %v2023_v11 = vunpack.i.h.bf16 %v2021_v54  ;;  %v2022_v31 = vunpack.i.l.bf16 %v2021_v54 }
 0x2a7   :  { %v864_v21 = vsel %vm863_vm4, %v860_v17, %v2023_v11  ;;  %v887_v43 = vsel %vm863_vm4, %v884_v42, %v2022_v31  ;;  %v1076_v42 = vld [vmem:[%s2763_s7 + $0x80] sm:$0xff] }
 0x2a8   :  { %v2026_v60 = vpop.permute.xlu1 %2025 }
 0x2a9   :  { %v2028_v23 = vunpack.i.h.bf16 %v2026_v60  ;;  %v2027_v24 = vunpack.i.l.bf16 %v2026_v60 }
 0x2ab   :  { %v2031_v8 = vpop.permute.xlu0 %2030  ;;  %v888_v6 = vsel %vm863_vm4, %v885_v33, %v2027_v24  ;;  %v865_v52 = vsel %vm863_vm4, %v861_v36, %v2028_v23  ;;  %v1066_v33 = vld [vmem:[%s2763_s7 + $0x30] sm:$0xff] }
 0x2ac   :  { %v2036_v12 = vpop.permute.xlu1 %2035  ;;  %v2033_v27 = vunpack.i.h.bf16 %v2031_v8  ;;  %v2032_v29 = vunpack.i.l.bf16 %v2031_v8 }
 0x2ad   :  { %v2038_v41 = vunpack.i.h.bf16 %v2036_v12  ;;  %v2037_v14 = vunpack.i.l.bf16 %v2036_v12 }
 0x2ae   :  { %v891_v57 = vsel %vm867_vm5, %v888_v6, %v2032_v29  ;;  %v869_v37 = vsel %vm867_vm5, %v865_v52, %v2033_v27  ;;  %v1080_v27 = vld [vmem:[%s2763_s7 + $0xa0] sm:$0xff]  ;;  %v1081_v29 = vld [vmem:[%s2763_s7 + $0xa8] sm:$0xff] }
 0x2af   :  { %v2051_v18 = vpop.permute.xlu0 %2050  ;;  %v868_v44 = vsel %vm867_vm5, %v864_v21, %v2038_v41  ;;  %v890_v32 = vsel %vm867_vm5, %v887_v43, %v2037_v14  ;;  %v1061_v21 = vld [vmem:[%s2763_s7 + $0x8] sm:$0xff]  ;;  %v1079_v43 = vld [vmem:[%s2763_s7 + $0x98] sm:$0xff] }
 0x2b0   :  { %v2041_v22 = vpop.permute.xlu1 %2040  ;;  %v2053_v9 = vunpack.i.h.bf16 %v2051_v18  ;;  %v2052_v54 = vunpack.i.l.bf16 %v2051_v18  ;;  %v1077_v18 = vld [vmem:[%s2763_s7 + $0x88] sm:$0xff]  ;;  %v1921_v23 = vpack.c.bf16 %v1061_v21, %v1060_v19 }
 0x2b1   :  { %v2043_v25 = vunpack.i.h.bf16 %v2041_v22  ;;  %v2042_v26 = vunpack.i.l.bf16 %v2041_v22  ;;  %v1919_v20 = vpack.c.bf16 %v1077_v18, %v1076_v42  ;;  %v1078_v22 = vld [vmem:[%s2763_s7 + $0x90] sm:$0xff] }
 0x2b2   :  { %v851_v61 = vsel %vm848_vm1, %v2343_v28, %v2053_v9  ;;  %v877_v62 = vsel %vm848_vm1, %v2405_v1, %v2052_v54  ;;  %v1923_v24 = vpack.c.bf16 %v1079_v43, %v1078_v22  ;;  %v1068_v9 = vld [vmem:[%s2763_s7 + $0x40] sm:$0xff]  ;;  %v1069_v54 = vld [vmem:[%s2763_s7 + $0x48] sm:$0xff] }
 0x2b3   :  { %v2061_v46 = vpop.permute.xlu0 %2060  ;;  %v893_v47 = vsel %vm871_vm6, %v890_v32, %v2042_v26  ;;  %v872_v48 = vsel %vm871_vm6, %v868_v44, %v2043_v25  ;;  %v1062_v25 = vld [vmem:[%s2763_s7 + $0x10] sm:$0xff]  ;;  %v1063_v26 = vld [vmem:[%s2763_s7 + $0x18] sm:$0xff]  ;;  %1920 = vmatprep.subr.bf16.mxu0 %v1919_v20  ;;  %v1927_v32 = vpack.c.bf16 %v1081_v29, %v1080_v27  ;;  %v1018_v43 = vld [vmem:[%s2765_s1] sm:$0x3] }
 0x2b4   :  { %999 = vmatprep.mubr.f32.mxu0 %v893_v47  ;;  %v2046_v49 = vpop.permute.xlu1 %2045  ;;  %v2063_v2 = vunpack.i.h.bf16 %v2061_v46  ;;  %v2062_v3 = vunpack.i.l.bf16 %v2061_v46  ;;  %v1925_v44 = vpack.c.bf16 %v1063_v26, %v1062_v25  ;;  %v1082_v46 = vld [vmem:[%s2763_s7 + $0xb0] sm:$0xff]  ;;  %v1083_v47 = vld [vmem:[%s2763_s7 + $0xb8] sm:$0xff]  ;;  %v1092_v27 = vld [vmem:[%s2763_s7 + $0x100] sm:$0xff] }
 0x2b5   :  { %v2048_v50 = vunpack.i.h.bf16 %v2046_v49  ;;  %v2047_v51 = vunpack.i.l.bf16 %v2046_v49  ;;  %1000 = vmatmul.mubr.f32.vlgmr.msra.gmra.mrb[16].mxu0 %v872_v48  ;;  %v1929_v48 = vpack.c.bf16 %v1065_v35, %v1064_v45  ;;  %v1931_v36 = vpack.c.bf16 %v1083_v47, %v1082_v46  ;;  %v1067_v49 = vld [vmem:[%s2763_s7 + $0x38] sm:$0xff]  ;;  %v1093_v29 = vld [vmem:[%s2763_s7 + $0x108] sm:$0xff] }
 0x2b6   :  { %1922 = vmatpush3.bf16.msra.mxu0 %v1921_v23  ;;  %v1933_v6 = vpack.c.bf16 %v1067_v49, %v1066_v33  ;;  %v1952_v47 = vpack.c.bf16 %v1093_v29, %v1092_v27  ;;  %v1094_v33 = vld [vmem:[%s2763_s7 + $0x110] sm:$0xff]  ;;  %v1095_v49 = vld [vmem:[%s2763_s7 + $0x118] sm:$0xff] }
 0x2b7   :  { %v894_v58 = vsel %vm871_vm6, %v891_v57, %v2047_v51  ;;  %v873_v59 = vsel %vm871_vm6, %v869_v37, %v2048_v50  ;;  %v2071_v34 = vpop.permute.xlu0 %2070  ;;  %1924 = vmatprep.subr.bf16.mxu0 %v1923_v24  ;;  %v1084_v50 = vld [vmem:[%s2763_s7 + $0xc0] sm:$0xff]  ;;  %v1085_v51 = vld [vmem:[%s2763_s7 + $0xc8] sm:$0xff]  ;;  %v1937_v57 = vpack.c.bf16 %v1069_v54, %v1068_v9  ;;  %v1086_v37 = vld [vmem:[%s2763_s7 + $0xd0] sm:$0xff] }
 0x2b8   :  { %v2056_v38 = vpop.permute.xlu1 %2055  ;;  %1004 = vmatprep.mubr.f32.mxu0 %v894_v58  ;;  %v2073_v11 = vunpack.i.h.bf16 %v2071_v34  ;;  %v2072_v1 = vunpack.i.l.bf16 %v2071_v34  ;;  %v1935_v52 = vpack.c.bf16 %v1085_v51, %v1084_v50  ;;  %v1087_v58 = vld [vmem:[%s2763_s7 + $0xd8] sm:$0xff]  ;;  %v1955_v51 = vpack.c.bf16 %v1095_v49, %v1094_v33  ;;  %v1248_v54 = vld [vmem:[%s2766_s9] sm:$0xff] }
 0x2b9   :  { %v2058_v55 = vunpack.i.h.bf16 %v2056_v38  ;;  %v2057_v60 = vunpack.i.l.bf16 %v2056_v38  ;;  %1005 = vmatmul.mubr.f32.gmra.mrb[18].mxu0 %v873_v59  ;;  %v1939_v59 = vpack.c.bf16 %v1087_v58, %v1086_v37  ;;  %v1070_v38 = vld [vmem:[%s2763_s7 + $0x50] sm:$0xff]  ;;  %v1071_v34 = vld [vmem:[%s2763_s7 + $0x58] sm:$0xff]  ;;  %v1096_v58 = vld [vmem:[%s2763_s7 + $0x120] sm:$0xff] }
 0x2ba   :  { %1926 = vmatpush3.bf16.msra.mxu0 %v1925_v44 }
 0x2bb   :  { %v855_v63 = vsel %vm852_vm2, %v851_v61, %v2058_v55  ;;  %v880_v0 = vsel %vm852_vm2, %v877_v62, %v2057_v60  ;;  %v2081_v10 = vpop.permute.xlu0 %2080  ;;  %1928 = vmatprep.subr.bf16.mxu0 %v1927_v32  ;;  %v1941_v55 = vpack.c.bf16 %v1071_v34, %v1070_v38  ;;  %v1088_v60 = vld [vmem:[%s2763_s7 + $0xe0] sm:$0xff]  ;;  %v1089_v61 = vld [vmem:[%s2763_s7 + $0xe8] sm:$0xff]  ;;  %v1250_v34 = vld [vmem:[%s2766_s9 + $0x10] sm:$0xff] }
 0x2bc   :  { %v2066_v4 = vpop.permute.xlu1 %2065  ;;  %v859_v7 = vsel %vm856_vm3, %v855_v63, %v2063_v2  ;;  %v883_v8 = vsel %vm856_vm3, %v880_v0, %v2062_v3  ;;  %v2083_v13 = vunpack.i.h.bf16 %v2081_v10  ;;  %v2082_v30 = vunpack.i.l.bf16 %v2081_v10  ;;  %v1072_v0 = vld [vmem:[%s2763_s7 + $0x60] sm:$0xff]  ;;  %v1073_v2 = vld [vmem:[%s2763_s7 + $0x68] sm:$0xff] }
 0x2bd   :  { %v2068_v39 = vunpack.i.h.bf16 %v2066_v4  ;;  %v2067_v5 = vunpack.i.l.bf16 %v2066_v4  ;;  %v1943_v63 = vpack.c.bf16 %v1089_v61, %v1088_v60  ;;  %v1358_v3 = vld [vmem:[%s2764_s6] ss:$0 sm:$0xff] }
 0x2be   :  { %1930 = vmatpush3.bf16.msra.mxu0 %v1929_v48  ;;  %v1252_v61 = vld [vmem:[%s2766_s9 + $0x20] sm:$0xff] }
 0x2bf   :  { %v862_v40 = vsel %vm69_vm0, %v859_v7, %v2068_v39  ;;  %v886_v28 = vsel %vm69_vm0, %v883_v8, %v2067_v5  ;;  %1932 = vmatprep.subr.bf16.mxu0 %v1931_v36  ;;  %v1945_v39 = vpack.c.bf16 %v1073_v2, %v1072_v0  ;;  %v1090_v7 = vld [vmem:[%s2763_s7 + $0xf0] sm:$0xff]  ;;  %v1091_v8 = vld [vmem:[%s2763_s7 + $0xf8] sm:$0xff] }
 0x2c0   :  { %v2076_v31 = vpop.permute.xlu1 %2075  ;;  %v889_v53 = vsel %vm863_vm4, %v886_v28, %v2072_v1  ;;  %v866_v41 = vsel %vm863_vm4, %v862_v40, %v2073_v11  ;;  %v1947_v28 = vpack.c.bf16 %v1091_v8, %v1090_v7  ;;  %v1074_v11 = vld [vmem:[%s2763_s7 + $0x70] sm:$0xff]  ;;  %v1075_v1 = vld [vmem:[%s2763_s7 + $0x78] sm:$0xff]  ;;  %v1359_v7 = vld [vmem:[%s2767_s8] ss:$0 sm:$0xff] }
 0x2c1   :  { %v2078_v12 = vunpack.i.h.bf16 %v2076_v31  ;;  %v2077_v56 = vunpack.i.l.bf16 %v2076_v31  ;;  %v1254_v0 = vld [vmem:[%s2766_s9 + $0x30] sm:$0xff]  ;;  %v1255_v2 = vld [vmem:[%s2766_s9 + $0x38] sm:$0xff] }
 0x2c2   :  { %1934 = vmatpush3.bf16.msra.mxu0 %v1933_v6  ;;  %v2093_v6 = vmov 0.0  }
 0x2c3   :  { %v892_v14 = vsel %vm867_vm5, %v889_v53, %v2077_v56  ;;  %v870_v15 = vsel %vm867_vm5, %v866_v41, %v2078_v12  ;;  %1936 = vmatprep.subr.bf16.mxu0 %v1935_v52  ;;  %v1949_v12 = vpack.c.bf16 %v1075_v1, %v1074_v11  ;;  %v1363_v11 = vld [vmem:[%s2768_s10] ss:$0 sm:$0xff] }
 0x2c4   :  { %v895_v16 = vsel %vm871_vm6, %v892_v14, %v2082_v30  ;;  %v874_v17 = vsel %vm871_vm6, %v870_v15, %v2083_v13  ;;  %v2091_v14 = vmov 0.0|0.0  }
 0x2c5   :  { %1009 = vmatprep.mubr.f32.mxu0 %v895_v16 }
 0x2c6   :  { %1010 = vmatmul.mubr.f32.gmra.mrb[20].mxu0 %v874_v17 }
 0x2c7   :  { %1938 = vmatpush3.bf16.msra.mxu0 %v1937_v57  ;;  %v1249_v57 = vld [vmem:[%s2766_s9 + $0x8] sm:$0xff] }
 0x2c8   :  { %1940 = vmatprep.subr.bf16.mxu0 %v1939_v59  ;;  %v1958_v59 = vpack.c.bf16 %v1249_v57, %v1248_v54 }
 0x2cb   :  { %1942 = vmatpush3.bf16.msra.mxu0 %v1941_v55  ;;  %v1251_v55 = vld [vmem:[%s2766_s9 + $0x18] sm:$0xff] }
 0x2cc   :  { %1944 = vmatprep.subr.bf16.mxu0 %v1943_v63  ;;  %v1961_v60 = vpack.c.bf16 %v1251_v55, %v1250_v34 }
 0x2cf   :  { %1946 = vmatpush3.bf16.msra.mxu0 %v1945_v39 }
 0x2d0   :  { %1948 = vmatprep.subr.bf16.mxu0 %v1947_v28 }
 0x2d3   :  { %1950 = vmatpush3.bf16.msra.mxu0 %v1949_v12 }
 0x2d4   :  { %1951 = vmatprep.subr.bf16.mxu0 %v2091_v14 }
 0x388   :  { %v1604_v62 = vpop.f32.mrb[16].mxu0 }
 0x389   :  { %v1605_v4 = vpop.f32.mrb[17].mxu0 }
 0x38a   :  { %v1606_v5 = vadd.f32 %v1605_v4, %v1604_v62  ;;  %v1253_v62 = vld [vmem:[%s2766_s9 + $0x28] sm:$0xff] }
 0x38b   :  { %v1964_v63 = vpack.c.bf16 %v1253_v62, %v1252_v61 }
 0x38c   :  { %v1002_v10 = vadd.f32 %v1606_v5, %v1358_v3  ;;  %v1607_v40 = vpop.f32.mrb[18].mxu0 }
 0x38d   :  { %v1608_v31 = vpop.f32.mrb[19].mxu0 }
 0x38e   :  { %v1015_v56 = vmax.f32 %v1002_v10, 0.0  ;;  %v1609_v13 = vadd.f32 %v1608_v31, %v1607_v40 }
 0x390   :  { %v1007_v30 = vadd.f32 %v1609_v13, %v1358_v3  ;;  %v1020_v53 = vrot.slane %v1015_v56, 2  ;;  %v1024_v15 = vrot.slane %v1015_v56, 4  ;;  %v1028_v17 = vrot.slane %v1015_v56, 6 }
 0x392   :  { %v1016_v41 = vmax.f32 %v1007_v30, 0.0  ;;  %1021 = vrot.lane.b32.xlu0 %v1020_v53, %s2085_s19 }
 0x394   :  { %v1033_v16 = vrot.slane %v1016_v41, 2  ;;  %v1037_v42 = vrot.slane %v1016_v41, 4  ;;  %v1041_v21 = vrot.slane %v1016_v41, 6 }
 0x396   :  { %1025 = vrot.lane.b32.xlu0 %v1024_v15, %s2087_s23  ;;  %1034 = vrot.lane.b32.xlu1 %v1033_v16, %s2085_s19 }
 0x399   :  { %v1610_v18 = vpop.f32.mrb[20].mxu0 }
 0x39a   :  { %1029 = vrot.lane.b32.xlu0 %v1028_v17, %s2089_s5  ;;  %v1611_v19 = vpop.f32.mrb[21].mxu0  ;;  %1038 = vrot.lane.b32.xlu1 %v1037_v42, %s2087_s23 }
 0x39b   :  { %v1612_v20 = vadd.f32 %v1611_v19, %v1610_v18 }
 0x39d   :  { %v1012_v22 = vadd.f32 %v1612_v20, %v1358_v3  ;;  %v1967_v3 = vpack.c.bf16 %v1255_v2, %v1254_v0 }
 0x39e   :  { %1042 = vrot.lane.b32.xlu1 %v1041_v21, %s2089_s5 }
 0x39f   :  { %v1017_v9 = vmax.f32 %v1012_v22, 0.0 }
 0x3a2   :  { %1046 = vrot.lane.b32.xlu1 %v1018_v43, %s2085_s19 }
 0x404   :  { %v1022_v23 = vpop.permute.xlu0 %1021 }
 0x405   :  { %v1049_v45 = vsel %vm852_vm2, %v1015_v56, %v1022_v23 }
 0x408   :  { %v1035_v24 = vpop.permute.xlu1 %1034  ;;  %v1026_v25 = vpop.permute.xlu0 %1025 }
 0x409   :  { %v1052_v44 = vsel %vm852_vm2, %v1016_v41, %v1035_v24  ;;  %v1050_v48 = vsel %vm69_vm0, %v1049_v45, %v1026_v25 }
 0x40c   :  { %v1039_v26 = vpop.permute.xlu1 %1038  ;;  %v1030_v32 = vpop.permute.xlu0 %1029 }
 0x40d   :  { %v1053_v35 = vsel %vm69_vm0, %v1052_v44, %v1039_v26  ;;  %v1051_v50 = vsel %vm867_vm5, %v1050_v48, %v1030_v32 }
 0x410   :  { %v1043_v46 = vpop.permute.xlu1 %1042 }
 0x411   :  { %v1054_v36 = vsel %vm867_vm5, %v1053_v35, %v1043_v46 }
 0x412   :  { %1360 = vmatprep.mubr.msk.f32.mxu0 %vm1056_vm7, %v1054_v36 }
 0x413   :  { %1361 = vmatmul.mubr.msk.f32.vlgmr.msra.gmra.mrb[22].mxu0 %vm1056_vm7, %v1051_v50 }
 0x414   :  { %1953 = vmatpush3.bf16.msra.mxu0 %v1952_v47  ;;  %1817 = vmatprep.mubr.msk.f32.mxu0 %vm2092_vm8, %v2093_v6  ;;  %v1047_v52 = vpop.permute.xlu1 %1046 }
 0x415   :  { %1954 = vmatprep.subr.bf16.mxu0 %v2091_v14  ;;  %v1055_v37 = vsel %vm852_vm2, %v1017_v9, %v1047_v52 }
 0x416   :  { %v1059_v38 = vsel %vm1056_vm7, %v1055_v37, 0.0 }
 0x418   :  { %1956 = vmatpush3.bf16.msra.mxu0 %v1955_v51 }
 0x419   :  { %1815 = vmatprep.subr.mxu0 %v2093_v6 }
 0x41c   :  { %1816 = vmatpush3.msra.mxu0 %v1096_v58 }
 0x41d   :  { %1818 = vmatmul.mubr.msk.f32.vlgmr.msra.gmra.mrb[24].mxu0 %vm1104_vm9, %v1059_v38  ;;  %1957 = vmatprep.subr.bf16.mxu0 %v2091_v14 }
 0x41e   :  { %1959 = vmatpush3.bf16.msra.mxu0 %v1958_v59  ;;  %1836 = vmatprep.mubr.msk.f32.mxu0 %vm2092_vm8, %v2093_v6 }
 0x41f   :  { %1960 = vmatprep.subr.bf16.mxu0 %v2091_v14 }
 0x422   :  { %1962 = vmatpush3.bf16.msra.mxu0 %v1961_v60 }
 0x423   :  { %1963 = vmatprep.subr.bf16.mxu0 %v2091_v14 }
 0x426   :  { %1965 = vmatpush3.bf16.msra.mxu0 %v1964_v63 }
 0x427   :  { %1966 = vmatprep.subr.bf16.mxu0 %v2091_v14 }
 0x42a   :  { %1968 = vmatpush3.bf16.msra.mxu0 %v1967_v3 }
 0x4e6   :  { %v1645_v4 = vpop.f32.mrb[22].mxu0 }
 0x4e7   :  { %v1646_v39 = vpop.f32.mrb[23].mxu0 }
 0x4e8   :  { %v1647_v5 = vadd.f32 %v1646_v39, %v1645_v4 }
 0x4ea   :  { %v1175_v8 = vadd.f32 %v1647_v5, %v1359_v7 }
 0x4f0   :  { %v1244_v10 = vpop.f32.mrb[24].mxu0 }
 0x4f1   :  { %v1245_v40 = vadd.f32 %v1244_v10, %v1175_v8  ;;  %v1819_v28 = vpop.f32.mrb[25].mxu0 }
 0x4f3   :  { %1837 = vmatmul.mubr.msk.f32.vlgmr.msra.gmra.mrb[26].mxu0 %vm69_vm0, %v1245_v40 }
 0x5c6   :  { %v1332_v1 = vpop.f32.mrb[26].mxu0 }
 0x5c7   :  { %v1333_v31 = vadd.f32 %v1363_v11, %v1332_v1  ;;  %v1838_v12 = vpop.f32.mrb[27].mxu0 }
 0x5c9   :  { %1336 = vst [vmem:[%s2769_s11] sm:$0xff] %v1333_v31 }

</bundles_post_ra>
